<compile_context>
chip_gen: v7x
topology: tpu7x:2x2x1
jax: 0.10.0
libtpu: 0.0.40
codegen_flags: <defaults>
</compile_context>

<pallas_src>
import math

import jax
import jax.numpy as jnp
from jax import lax
from jax.experimental import pallas as pl
from jax.experimental.pallas import tpu as pltpu

# ---------------------------------------------------------------------------
# Sizes.  NOTE: S == H is required for the reference `.view(batch, hid*hid)`
# inside getKL4AttentionMatrix to be well defined (scores are (B, S, S)).
# ---------------------------------------------------------------------------
B = 2              # batch
S = 64             # sequence length
H = 64             # hidden size (== S, see note above)
T = 3 * S          # concatenated sequence length (semantic | glyph | speech)
NH = 8             # attention heads in TransformerBlock
DH = H // NH       # head dim
FF = 4 * H         # feed-forward hidden
BS = B * S         # rows of the cls matmul
VOCAB = 21128      # cls output vocab (hard-coded in the reference module)
VOCAB_PAD = 21504  # 168 * 128 — lane-aligned padded vocab
TN = 5376          # vocab tile (42 * 128); VOCAB_PAD / TN = 4 even grid steps
NUM_TILES = VOCAB_PAD // TN
TOKVOCAB = 128     # input-id vocab for the synthetic stand-in encoders


# ---------------------------------------------------------------------------
# Kernel 1: fused Gram matmul + masking + per-pair KL reduction
# (getKL4AttentionMatrix hot path).  G = L @ L^T / sqrt(H), L = (3S, H).
# For each of the 6 off-diagonal (S,S) pair blocks the kernel computes the
# flattened softmax target and log-softmax and accumulates the two scalar
# pieces of sum_i KLDivLoss(logsoftmax(cat(pairs)), softmax(pair_i)), so the
# only output is one scalar per batch.
# ---------------------------------------------------------------------------
def _gram_kl_kernel(l_ref, ms_ref, mt_ref, o_ref):
    l = l_ref[0].astype(jnp.bfloat16)                       # (T, H)
    g = lax.dot_general(l, l, (((1,), (1,)), ((), ())),
                        preferred_element_type=jnp.float32)
    g = g * (1.0 / math.sqrt(H))                            # (T, T)
    # mask values are exactly 0/1 floats; mask product built in-kernel.
    keep = (ms_ref[0] > 0.5) & (mt_ref[0] > 0.5)            # (S,1)&(1,S)->(S,S)

    pairs = ((0, 1), (0, 2), (1, 2), (1, 0), (2, 0), (2, 1))
    t_sum = jnp.zeros((S, S), jnp.float32)                  # sum_i softmax(s_i)
    a_sum = jnp.zeros((S, S), jnp.float32)                  # sum_i logsoftmax(s_i)
    h_sum = jnp.zeros((1, 1), jnp.float32)                  # sum_i sum t_i log t_i
    for (i, j) in pairs:
        sblk = jnp.where(keep, g[i * S:(i + 1) * S, j * S:(j + 1) * S], -1e9)
        m = jnp.max(sblk, keepdims=True)                    # global max over S*S
        e = jnp.exp(sblk - m)
        z = jnp.sum(e, keepdims=True)
        t = e * (1.0 / z)                                   # softmax target
        logsm = sblk - (m + jnp.log(z))                     # log-softmax
        h_sum = h_sum + jnp.sum(t * logsm, keepdims=True)
        t_sum = t_sum + t
        a_sum = a_sum + logsm
    # kloss contribution of this batch (before the global 1/(6B) batchmean).
    klpart = 6.0 * h_sum - jnp.sum(t_sum * a_sum, keepdims=True)
    o_ref[...] = jnp.broadcast_to(klpart, (1, 8, 128))


def gram_kl_loss(lcat, mask):
    """lcat: (B, T, H) = cat(l1|l2|l3, dim=1); mask: (B, S, 1) float 0/1."""
    mask_row = jnp.transpose(mask, (0, 2, 1))                # (B, 1, S) glue
    parts = pl.pallas_call(
        _gram_kl_kernel,
        out_shape=jax.ShapeDtypeStruct((B, 8, 128), jnp.float32),
        grid=(B,),
        in_specs=[
            pl.BlockSpec((1, T, H), lambda b: (b, 0, 0)),
            pl.BlockSpec((1, S, 1), lambda b: (b, 0, 0)),
            pl.BlockSpec((1, 1, S), lambda b: (b, 0, 0)),
        ],
        out_specs=pl.BlockSpec((1, 8, 128), lambda b: (b, 0, 0)),
        compiler_params=pltpu.CompilerParams(
            dimension_semantics=("parallel",)),
    )(lcat, mask, mask_row)
    # TODO(synk): reference broadcasts a (B, N) KL target against a (6B, N)
    # input (ill-defined for B > 1); the target is tiled, as acknowledged.
    return jnp.sum(parts[:, 0, 0]) / (6.0 * B)


# ---------------------------------------------------------------------------
# Kernel 2: InfoNCE cosine-similarity matrix (getInfoNCELoss hot path).
# Row-blocked grid (2 even steps) so both TensorCores work on v7x; bf16 matmul
# operands, f32 accumulation.
# ---------------------------------------------------------------------------
TQ_SIM = 192   # 384 / 192 = 2 even row blocks


def _cos_sim_kernel(xr_ref, xa_ref, o_ref):
    def norm(v):
        ss = jnp.sum(v * v, axis=-1, keepdims=True)
        return v * lax.rsqrt(jnp.maximum(ss, 1e-16))         # == v / max(||v||,1e-8)

    xr = norm(xr_ref[...]).astype(jnp.bfloat16)              # (TQ, H)
    xa = norm(xa_ref[...]).astype(jnp.bfloat16)              # (N,  H)
    s = lax.dot_general(xr, xa, (((1,), (1,)), ((), ())),
                        preferred_element_type=jnp.float32)  # (TQ, N)
    ri = lax.broadcasted_iota(jnp.int32, s.shape, 0) + pl.program_id(0) * TQ_SIM
    ci = lax.broadcasted_iota(jnp.int32, s.shape, 1)
    eye = (ri == ci).astype(jnp.float32)
    o_ref[...] = (s - eye * 1e12) * 20.0                     # / 0.05


def cosine_sim_matrix(l123):
    n, h = l123.shape
    return pl.pallas_call(
        _cos_sim_kernel,
        out_shape=jax.ShapeDtypeStruct((n, n), jnp.float32),
        grid=(n // TQ_SIM,),
        in_specs=[pl.BlockSpec((TQ_SIM, h), lambda i: (i, 0)),
                  pl.BlockSpec((n, h),      lambda i: (0, 0))],
        out_specs=pl.BlockSpec((TQ_SIM, n), lambda i: (i, 0)),
        compiler_params=pltpu.CompilerParams(
            dimension_semantics=("parallel",)),
    )(l123, l123)


# ---------------------------------------------------------------------------
# Kernel 3: fused 3x TransformerBlock (pre-norm, 8-head attention + GELU FFN;
# dropout = identity at inference) + sigmoid gate + segment residual merge.
# Heads are handled with a block-diagonal K/V layout:  K_big = tile(K) * mv,
# V_big = tile(V) * mv with mv[h*T+t, d] = (d // DH == h), so scores are ONE
# lane-dense (T, NH*T) K=64 matmul and ctx is ONE (T, NH*T)x(NH*T, H) matmul.
# A single per-row max is shared by all heads (softmax is shift-invariant per
# row, so per-head softmax stays exact).  All MXU operands are bf16.
# ---------------------------------------------------------------------------
def _gelu(x):
    return 0.5 * x * (1.0 + jnp.tanh(math.sqrt(2.0 / math.pi)
                                     * (x + 0.044715 * x * x * x)))


def _layernorm(x, g, b):
    # bert-pytorch LayerNorm: gamma*(x-mean)/(std+eps)+beta, unbiased std.
    # Exact divide (no approx reciprocal) per correctness feedback.
    mean = jnp.mean(x, axis=-1, keepdims=True)
    d = x - mean
    var = jnp.sum(d * d, axis=-1, keepdims=True) / (x.shape[-1] - 1)
    return g * d / (jnp.sqrt(var) + 1e-6) + b


def _fused_tf_gate_kernel(x_ref, det_ref, mv_ref, wqkvo_ref, bqkvo_ref, ln_ref,
                          w1_ref, b1_ref, w2_ref, b2_ref, o_ref):
    li = x_ref[0]                                   # (T, H) f32 = cat(l1,l2,l3)
    mv = mv_ref[...]                                # (NH*T, H) bf16 head mask
    x = li
    scale = 1.0 / math.sqrt(DH)

    for blk in range(3):                            # 3 TransformerBlocks
        # ---- attention sublayer ----
        xn = _layernorm(x, ln_ref[blk, 0], ln_ref[blk, 1]).astype(jnp.bfloat16)
        # TODO(synk): reference passes semantic_input_ids (B,S) as the attention
        # mask, shape-incompatible with (B, heads, 3S, 3S) scores; no mask used.
        q = (jnp.dot(xn, wqkvo_ref[blk, 0],
                     preferred_element_type=jnp.float32)
             + bqkvo_ref[blk, 0]) * scale           # scale folded into q
        k = (jnp.dot(xn, wqkvo_ref[blk, 1],
                     preferred_element_type=jnp.float32) + bqkvo_ref[blk, 1])
        v = (jnp.dot(xn, wqkvo_ref[blk, 2],
                     preferred_element_type=jnp.float32) + bqkvo_ref[blk, 2])
        kb = jnp.concatenate([k.astype(jnp.bfloat16)] * NH, axis=0) * mv
        vb = jnp.concatenate([v.astype(jnp.bfloat16)] * NH, axis=0) * mv
        s = lax.dot_general(q.astype(jnp.bfloat16), kb,
                            (((1,), (1,)), ((), ())),
                            preferred_element_type=jnp.float32)  # (T, NH*T)
        m = jnp.max(s, axis=-1, keepdims=True)
        e = jnp.exp(s - m).astype(jnp.bfloat16)
        den = jnp.dot(e, mv, preferred_element_type=jnp.float32)  # per-head sums
        ctx = (jnp.dot(e, vb, preferred_element_type=jnp.float32)
               * pl.reciprocal(den, approx=True))                  # (T, H)
        ao = (jnp.dot(ctx.astype(jnp.bfloat16), wqkvo_ref[blk, 3],
                      preferred_element_type=jnp.float32) + bqkvo_ref[blk, 3])
        x = x + ao

        # ---- feed-forward sublayer ----
        xn2 = _layernorm(x, ln_ref[blk, 2], ln_ref[blk, 3]).astype(jnp.bfloat16)
        hmid = _gelu(jnp.dot(xn2, w1_ref[blk],
                             preferred_element_type=jnp.float32) + b1_ref[blk])
        x = x + jnp.dot(hmid.astype(jnp.bfloat16), w2_ref[blk],
                        preferred_element_type=jnp.float32) + b2_ref[blk]

    # ---- sigmoid gate + segment residuals + branch sum ----
    # logits = out*P + in*(1-P);  result = sum_k (logits[:,kS:(k+1)S] + l_k)
    #        = P * sum_k out_k + (2 - P) * sum_k in_k
    # TODO(synk): reference multiplies (B,3S,H) by sigmoid of (B,S) detect
    # logits (shape-incompatible); detect probs broadcast over hidden + tiled
    # over the 3 segments.
    p = jax.nn.sigmoid(det_ref[0])                  # (S, 1)
    sum_lo = x[0:S] + x[S:2 * S] + x[2 * S:3 * S]
    sum_li = li[0:S] + li[S:2 * S] + li[2 * S:3 * S]
    o_ref[0] = (p * sum_lo + (2.0 - p) * sum_li).astype(jnp.bfloat16)


def fused_transformer_gate(x, det, mv, params):
    return pl.pallas_call(
        _fused_tf_gate_kernel,
        out_shape=jax.ShapeDtypeStruct((B, S, H), jnp.bfloat16),
        grid=(B,),
        in_specs=[
            pl.BlockSpec((1, T, H),    lambda b: (b, 0, 0)),
            pl.BlockSpec((1, S, 1),    lambda b: (b, 0, 0)),
            pl.BlockSpec((NH * T, H),  lambda b: (0, 0)),
            pl.BlockSpec((3, 4, H, H), lambda b: (0, 0, 0, 0)),
            pl.BlockSpec((3, 4, H),    lambda b: (0, 0, 0)),
            pl.BlockSpec((3, 4, H),    lambda b: (0, 0, 0)),
            pl.BlockSpec((3, H, FF),   lambda b: (0, 0, 0)),
            pl.BlockSpec((3, FF),      lambda b: (0, 0)),
            pl.BlockSpec((3, FF, H),   lambda b: (0, 0, 0)),
            pl.BlockSpec((3, H),       lambda b: (0, 0)),
        ],
        out_specs=pl.BlockSpec((1, S, H), lambda b: (b, 0, 0)),
        compiler_params=pltpu.CompilerParams(
            dimension_semantics=("parallel",)),
    )(x, det, mv, params['wqkvo'], params['bqkvo'], params['ln'],
      params['w1'], params['b1'], params['w2'], params['b2'])


# ---------------------------------------------------------------------------
# Kernel 4: cls projection + fused cross-entropy statistics.  x is the bf16
# (B*S, H) output of kernel 3 (cast hoisted); bf16 weights streamed in TN=5376
# lane tiles (4 even "parallel" grid steps); f32 accumulation.  Each step emits
# its bf16 logits tile plus per-row (max, sum-exp, picked-label-logit) computed
# from the f32 accumulator, so the huge logits tensor is never re-read for CE.
# ---------------------------------------------------------------------------
def _cls_kernel(x_ref, w_ref, b_ref, lab_ref, o_ref, m_ref, s_ref, p_ref):
    j = pl.program_id(0)
    acc = (jnp.dot(x_ref[...], w_ref[...],
                   preferred_element_type=jnp.float32) + b_ref[...])  # (BS, TN)
    # TODO(synk): logits returned in bf16 (halved HBM writeback); CE statistics
    # below use the f32 accumulator so the loss keeps full precision.
    o_ref[...] = acc.astype(jnp.bfloat16)

    lane = lax.broadcasted_iota(jnp.int32, (BS, TN), 1) + j * TN
    lab = lab_ref[...]                                                # (BS, 1)
    p_ref[0] = jnp.sum(jnp.where(lane == lab, acc, 0.0),
                       axis=-1, keepdims=True)
    accm = jnp.where(lane < VOCAB, acc, -1e30)        # exclude padded columns
    m = jnp.max(accm, axis=-1, keepdims=True)
    m_ref[0] = m
    s_ref[0] = jnp.sum(jnp.exp(accm - m), axis=-1, keepdims=True)


def cls_head_and_ce(x_bf16, w_bf16, b_f32, labels):
    xm = x_bf16.reshape(BS, H)
    lab2 = labels.reshape(BS, 1).astype(jnp.int32)
    logits_pad, tmax, tsum, tpick = pl.pallas_call(
        _cls_kernel,
        out_shape=(
            jax.ShapeDtypeStruct((BS, VOCAB_PAD), jnp.bfloat16),
            jax.ShapeDtypeStruct((NUM_TILES, BS, 1), jnp.float32),
            jax.ShapeDtypeStruct((NUM_TILES, BS, 1), jnp.float32),
            jax.ShapeDtypeStruct((NUM_TILES, BS, 1), jnp.float32),
        ),
        grid=(NUM_TILES,),
        in_specs=[
            pl.BlockSpec((BS, H), lambda j: (0, 0)),
            pl.BlockSpec((H, TN), lambda j: (0, j)),
            pl.BlockSpec((1, TN), lambda j: (0, j)),
            pl.BlockSpec((BS, 1), lambda j: (0, 0)),
        ],
        out_specs=(
            pl.BlockSpec((BS, TN),   lambda j: (0, j)),
            pl.BlockSpec((1, BS, 1), lambda j: (j, 0, 0)),
            pl.BlockSpec((1, BS, 1), lambda j: (j, 0, 0)),
            pl.BlockSpec((1, BS, 1), lambda j: (j, 0, 0)),
        ),
        compiler_params=pltpu.CompilerParams(
            dimension_semantics=("parallel",),
            vmem_limit_bytes=40 * 1024 * 1024),      # headroom for the bigger tile
    )(xm, w_bf16, b_f32, lab2)

    # Tiny (4, 128) combine of per-tile stats -> per-row NLL (plain JAX glue).
    tmax = tmax[..., 0]
    tsum = tsum[..., 0]
    tpick = tpick[..., 0]
    gmax = jnp.max(tmax, axis=0)
    lse = gmax + jnp.log(jnp.sum(tsum * jnp.exp(tmax - gmax), axis=0))
    nll = lse - jnp.sum(tpick, axis=0)
    valid = (labels.reshape(-1) != 0).astype(jnp.float32)     # ignore_index=0
    ce = jnp.sum(nll * valid) / jnp.maximum(jnp.sum(valid), 1.0)

    logits = logits_pad[:, :VOCAB].reshape(B, S, VOCAB)
    return logits, ce


# ---------------------------------------------------------------------------
# Loss glue (operate on kernel outputs).
# ---------------------------------------------------------------------------
def infonce_loss(sim):
    n = sim.shape[0]                                  # 3 * B * S
    base = n // 3
    idx = jnp.arange(n)
    y1 = (idx + base) % n
    y2 = (idx + 2 * base) % n
    logp = jax.nn.log_softmax(sim, axis=-1)
    return -jnp.mean(logp[idx, y1]) - jnp.mean(logp[idx, y2])


def bce_with_logits(logits, labels):
    z, y = logits, labels.astype(jnp.float32)
    return jnp.mean(jnp.logaddexp(0.0, z) - z * y)


# ---------------------------------------------------------------------------
# Parameters (deterministic, in-script).
# ---------------------------------------------------------------------------
def init_params(key):
    ks = jax.random.split(key, 12)

    def nrm(k, shape, scale=0.02):
        return (scale * jax.random.normal(k, shape)).astype(jnp.float32)

    params = {}
    # TODO(synk): pretrained Semantic/Glyph/Speech/Detect encoders are
    # unavailable (checkpoint loads); replaced by embedding-table stand-ins.
    params['emb_sem'] = nrm(ks[0], (TOKVOCAB, H), 1.0)
    params['emb_gly'] = nrm(ks[1], (TOKVOCAB, H), 1.0)
    params['emb_spc'] = nrm(ks[2], (TOKVOCAB, H), 1.0)
    params['emb_det'] = nrm(ks[3], (TOKVOCAB, H), 1.0)
    params['w_det'] = nrm(ks[4], (H,))
    params['b_det'] = jnp.zeros((), jnp.float32)

    # 3 TransformerBlocks, weights stacked on a leading (3, ...) axis, bf16 for
    # the MXU; biases / LayerNorm params stay f32.
    params['wqkvo'] = nrm(ks[5], (3, 4, H, H)).astype(jnp.bfloat16)
    params['bqkvo'] = jnp.zeros((3, 4, H), jnp.float32)
    ln_one = jnp.stack([jnp.ones((H,)), jnp.zeros((H,)),
                        jnp.ones((H,)), jnp.zeros((H,))], axis=0)
    params['ln'] = jnp.broadcast_to(ln_one, (3, 4, H)).astype(jnp.float32)
    params['w1'] = nrm(ks[6], (3, H, FF)).astype(jnp.bfloat16)
    params['b1'] = jnp.zeros((3, FF), jnp.float32)
    params['w2'] = nrm(ks[7], (3, FF, H)).astype(jnp.bfloat16)
    params['b2'] = jnp.zeros((3, H), jnp.float32)

    # cls weight: bf16, zero-padded to the lane-aligned vocab.
    cls_w = nrm(ks[8], (H, VOCAB))
    cls_w = jnp.pad(cls_w, ((0, 0), (0, VOCAB_PAD - VOCAB)))
    params['cls_w'] = cls_w.astype(jnp.bfloat16)
    params['cls_b'] = jnp.zeros((1, VOCAB_PAD), jnp.float32)

    # Block-diagonal head mask: mv[h*T + t, d] = 1 iff d // DH == h.
    params['mv'] = (jnp.arange(NH * T)[:, None] // T
                    == jnp.arange(H)[None, :] // DH).astype(jnp.bfloat16)
    return params


# ---------------------------------------------------------------------------
# Corrector.forward (if_pretrain=False branch).
# ---------------------------------------------------------------------------
def corrector_forward(params, x):
    l_sem = params['emb_sem'][x['semantic_input_ids']]        # (B, S, H)
    l_gly = params['emb_gly'][x['glyph_input_ids']]
    l_spc = params['emb_spc'][x['semantic_input_ids']]        # SpeechModel gets semantic ids (as in reference)
    det_hidden = params['emb_det'][x['detector_input_ids']]
    detect_logits = (jnp.einsum('bsh,h->bs', det_hidden, params['w_det'])
                     + params['b_det'])                       # (B, S)
    # TODO(synk): ELECTRA discriminator loss path is synthesized as BCE-with-logits.
    detect_loss = bce_with_logits(detect_logits, x['detect_label'])

    mask = x['semantic_attention_mask']                       # (B, S, 1) float
    logits_in = jnp.concatenate([l_sem, l_gly, l_spc], axis=1)    # (B, 3S, H)

    # --- KL over pairwise attention matrices: one fused Gram+KL kernel ---
    kloss = gram_kl_loss(logits_in, mask)

    # --- InfoNCE (Pallas cosine-similarity kernel) ---
    # TODO(synk): reference mask path in getInfoNCELoss is shape-inconsistent
    # ((3BS,H) logits vs (6,6) mask); treated as mask=None.
    l123 = jnp.concatenate([l_sem.reshape(-1, H), l_gly.reshape(-1, H),
                            l_spc.reshape(-1, H)], axis=0)    # (3BS, H)
    sim = cosine_sim_matrix(l123)
    nce = infonce_loss(sim)

    # --- fused fusion branch: 3 TransformerBlocks + gate + merge, one call ---
    merged = fused_transformer_gate(logits_in, detect_logits[:, :, None],
                                    params['mv'], params)     # (B, S, H) bf16

    # --- cls projection + fused cross-entropy statistics ---
    logits, ce = cls_head_and_ce(merged, params['cls_w'], params['cls_b'],
                                 x['tar_label'])              # (B, S, VOCAB)

    loss = detect_loss + nce + kloss + ce
    return logits, loss


# ---------------------------------------------------------------------------
if __name__ == "__main__":
    key = jax.random.PRNGKey(0)
    pk, dk = jax.random.split(key)
    params = init_params(pk)
    iks = jax.random.split(dk, 8)

    def ids(k):
        return jax.random.randint(k, (B, S), 1, TOKVOCAB, dtype=jnp.int32)

    mask = jnp.ones((B, S, 1), jnp.float32).at[1, S - 4:, 0].set(0.0)
    x = {
        'semantic_input_ids': ids(iks[0]),
        'semantic_token_type_ids': jnp.zeros((B, S), jnp.int32),
        'semantic_attention_mask': mask,
        'glyph_input_ids': ids(iks[1]),
        'glyph_token_type_ids': jnp.zeros((B, S), jnp.int32),
        'glyph_attention_mask': jnp.ones((B, S, 1), jnp.float32),
        'detector_input_ids': ids(iks[2]),
        'detector_token_type_ids': jnp.zeros((B, S), jnp.int32),
        'detector_attention_mask': jnp.ones((B, S, 1), jnp.float32),
        'detect_label': jax.random.randint(iks[3], (B, S), 0, 2, dtype=jnp.int32),
        'tar_label': jax.random.randint(iks[4], (B, S), 0, VOCAB, dtype=jnp.int32),
    }

    logits, loss = corrector_forward(params, x)
    jax.block_until_ready((logits, loss))
    assert logits.shape == (B, S, VOCAB)
    assert bool(jnp.isfinite(loss))
    print("KERNEL_OK")
</pallas_src>

<mosaic_0001>
module attributes {stable_mosaic.version = 11 : i64} {
  func.func @_gram_kl_kernel(%arg0: i32, %arg1: memref<1x192x64xf32, #tpu.memory_space<vmem>>, %arg2: memref<1x64x1xf32, #tpu.memory_space<vmem>>, %arg3: memref<1x1x64xf32, #tpu.memory_space<vmem>>, %arg4: memref<1x8x128xf32, #tpu.memory_space<vmem>>) attributes {dimension_semantics = [#tpu.dimension_semantics<parallel>], iteration_bounds = array<i64: 2>, scalar_prefetch = 0 : i64, scratch_operands = 0 : i64, tpu.core_type = #tpu.core_type<tc>, window_params = [{transform_indices = @transform_0, window_bounds = array<i64: 1, 192, 64>}, {transform_indices = @transform_1, window_bounds = array<i64: 1, 64, 1>}, {transform_indices = @transform_2, window_bounds = array<i64: 1, 1, 64>}, {transform_indices = @transform_3, window_bounds = array<i64: 1, 8, 128>}]} {
    %c0 = arith.constant 0 : index
    %c0_0 = arith.constant 0 : index
    %c0_1 = arith.constant 0 : index
    %0 = vector.load %arg1[%c0, %c0_0, %c0_1] : memref<1x192x64xf32, #tpu.memory_space<vmem>>, vector<1x192x64xf32>
    %1 = vector.shape_cast %0 : vector<1x192x64xf32> to vector<192x64xf32>
    %2 = arith.truncf %1 : vector<192x64xf32> to vector<192x64xbf16>
    %cst = arith.constant dense<0.000000e+00> : vector<192x192xf32>
    %3 = tpu.matmul %2, %2, %cst {dimension_numbers = #tpu.dot_dimension_numbers<[1], [1], [0], [0], [0, 0, 1, 0], [], []>} : vector<192x64xbf16>, vector<192x64xbf16>, vector<192x192xf32> -> vector<192x192xf32>
    %cst_2 = arith.constant 1.250000e-01 : f32
    %4 = vector.broadcast %cst_2 : f32 to vector<192x192xf32>
    %5 = arith.mulf %3, %4 : vector<192x192xf32>
    %c0_3 = arith.constant 0 : index
    %c0_4 = arith.constant 0 : index
    %c0_5 = arith.constant 0 : index
    %6 = vector.load %arg2[%c0_3, %c0_4, %c0_5] : memref<1x64x1xf32, #tpu.memory_space<vmem>>, vector<1x64x1xf32>
    %7 = vector.shape_cast %6 : vector<1x64x1xf32> to vector<64x1xf32>
    %cst_6 = arith.constant 5.000000e-01 : f32
    %8 = vector.broadcast %cst_6 : f32 to vector<64x1xf32>
    %9 = arith.cmpf ogt, %7, %8 : vector<64x1xf32>
    %c0_7 = arith.constant 0 : index
    %c0_8 = arith.constant 0 : index
    %c0_9 = arith.constant 0 : index
    %10 = vector.load %arg3[%c0_7, %c0_8, %c0_9] : memref<1x1x64xf32, #tpu.memory_space<vmem>>, vector<1x1x64xf32>
    %11 = vector.shape_cast %10 : vector<1x1x64xf32> to vector<1x64xf32>
    %cst_10 = arith.constant 5.000000e-01 : f32
    %12 = vector.broadcast %cst_10 : f32 to vector<1x64xf32>
    %13 = arith.cmpf ogt, %11, %12 : vector<1x64xf32>
    %14 = vector.broadcast %9 : vector<64x1xi1> to vector<64x64xi1>
    %15 = vector.broadcast %13 : vector<1x64xi1> to vector<64x64xi1>
    %16 = arith.andi %14, %15 : vector<64x64xi1>
    %cst_11 = arith.constant 0.000000e+00 : f32
    %17 = vector.broadcast %cst_11 : f32 to vector<64x64xf32>
    %cst_12 = arith.constant 0.000000e+00 : f32
    %18 = vector.broadcast %cst_12 : f32 to vector<64x64xf32>
    %cst_13 = arith.constant 0.000000e+00 : f32
    %19 = vector.broadcast %cst_13 : f32 to vector<1x1xf32>
    %20 = vector.extract_strided_slice %5 {offsets = [0, 64], sizes = [64, 64], strides = [1, 1]} : vector<192x192xf32> to vector<64x64xf32>
    %cst_14 = arith.constant -1.000000e+09 : f32
    %21 = vector.broadcast %cst_14 : f32 to vector<64x64xf32>
    %22 = arith.select %16, %20, %21 : vector<64x64xi1>, vector<64x64xf32>
    %23 = vector.shape_cast %22 : vector<64x64xf32> to vector<1x64x64xf32>
    %cst_15 = arith.constant dense<0xFF800000> : vector<1xf32>
    %24 = vector.multi_reduction <maximumf>, %23, %cst_15 [1, 2] : vector<1x64x64xf32> to vector<1xf32>
    %25 = vector.shape_cast %24 : vector<1xf32> to vector<1x1x1xf32>
    %26 = vector.extract %25[0, 0, 0] : f32 from vector<1x1x1xf32>
    %27 = vector.broadcast %26 : f32 to vector<1x1xf32>
    %28 = vector.broadcast %27 : vector<1x1xf32> to vector<64x64xf32>
    %29 = arith.subf %22, %28 : vector<64x64xf32>
    %30 = math.exp %29 : vector<64x64xf32>
    %31 = vector.shape_cast %30 : vector<64x64xf32> to vector<1x64x64xf32>
    %cst_16 = arith.constant dense<0.000000e+00> : vector<1xf32>
    %32 = vector.multi_reduction <add>, %31, %cst_16 [1, 2] : vector<1x64x64xf32> to vector<1xf32>
    %33 = vector.shape_cast %32 : vector<1xf32> to vector<1x1x1xf32>
    %34 = vector.extract %33[0, 0, 0] : f32 from vector<1x1x1xf32>
    %35 = vector.broadcast %34 : f32 to vector<1x1xf32>
    %cst_17 = arith.constant 1.000000e+00 : f32
    %36 = vector.broadcast %cst_17 : f32 to vector<1x1xf32>
    %37 = arith.divf %36, %35 : vector<1x1xf32>
    %38 = vector.broadcast %37 : vector<1x1xf32> to vector<64x64xf32>
    %39 = arith.mulf %30, %38 : vector<64x64xf32>
    %40 = math.log %35 : vector<1x1xf32>
    %41 = arith.addf %27, %40 : vector<1x1xf32>
    %42 = vector.broadcast %41 : vector<1x1xf32> to vector<64x64xf32>
    %43 = arith.subf %22, %42 : vector<64x64xf32>
    %44 = arith.mulf %39, %43 : vector<64x64xf32>
    %45 = vector.shape_cast %44 : vector<64x64xf32> to vector<1x64x64xf32>
    %cst_18 = arith.constant dense<0.000000e+00> : vector<1xf32>
    %46 = vector.multi_reduction <add>, %45, %cst_18 [1, 2] : vector<1x64x64xf32> to vector<1xf32>
    %47 = vector.shape_cast %46 : vector<1xf32> to vector<1x1x1xf32>
    %48 = vector.extract %47[0, 0, 0] : f32 from vector<1x1x1xf32>
    %49 = vector.broadcast %48 : f32 to vector<1x1xf32>
    %50 = arith.addf %19, %49 : vector<1x1xf32>
    %51 = arith.addf %17, %39 : vector<64x64xf32>
    %52 = arith.addf %18, %43 : vector<64x64xf32>
    %53 = vector.extract_strided_slice %5 {offsets = [0, 128], sizes = [64, 64], strides = [1, 1]} : vector<192x192xf32> to vector<64x64xf32>
    %cst_19 = arith.constant -1.000000e+09 : f32
    %54 = vector.broadcast %cst_19 : f32 to vector<64x64xf32>
    %55 = arith.select %16, %53, %54 : vector<64x64xi1>, vector<64x64xf32>
    %56 = vector.shape_cast %55 : vector<64x64xf32> to vector<1x64x64xf32>
    %cst_20 = arith.constant dense<0xFF800000> : vector<1xf32>
    %57 = vector.multi_reduction <maximumf>, %56, %cst_20 [1, 2] : vector<1x64x64xf32> to vector<1xf32>
    %58 = vector.shape_cast %57 : vector<1xf32> to vector<1x1x1xf32>
    %59 = vector.extract %58[0, 0, 0] : f32 from vector<1x1x1xf32>
    %60 = vector.broadcast %59 : f32 to vector<1x1xf32>
    %61 = vector.broadcast %60 : vector<1x1xf32> to vector<64x64xf32>
    %62 = arith.subf %55, %61 : vector<64x64xf32>
    %63 = math.exp %62 : vector<64x64xf32>
    %64 = vector.shape_cast %63 : vector<64x64xf32> to vector<1x64x64xf32>
    %cst_21 = arith.constant dense<0.000000e+00> : vector<1xf32>
    %65 = vector.multi_reduction <add>, %64, %cst_21 [1, 2] : vector<1x64x64xf32> to vector<1xf32>
    %66 = vector.shape_cast %65 : vector<1xf32> to vector<1x1x1xf32>
    %67 = vector.extract %66[0, 0, 0] : f32 from vector<1x1x1xf32>
    %68 = vector.broadcast %67 : f32 to vector<1x1xf32>
    %cst_22 = arith.constant 1.000000e+00 : f32
    %69 = vector.broadcast %cst_22 : f32 to vector<1x1xf32>
    %70 = arith.divf %69, %68 : vector<1x1xf32>
    %71 = vector.broadcast %70 : vector<1x1xf32> to vector<64x64xf32>
    %72 = arith.mulf %63, %71 : vector<64x64xf32>
    %73 = math.log %68 : vector<1x1xf32>
    %74 = arith.addf %60, %73 : vector<1x1xf32>
    %75 = vector.broadcast %74 : vector<1x1xf32> to vector<64x64xf32>
    %76 = arith.subf %55, %75 : vector<64x64xf32>
    %77 = arith.mulf %72, %76 : vector<64x64xf32>
    %78 = vector.shape_cast %77 : vector<64x64xf32> to vector<1x64x64xf32>
    %cst_23 = arith.constant dense<0.000000e+00> : vector<1xf32>
    %79 = vector.multi_reduction <add>, %78, %cst_23 [1, 2] : vector<1x64x64xf32> to vector<1xf32>
    %80 = vector.shape_cast %79 : vector<1xf32> to vector<1x1x1xf32>
    %81 = vector.extract %80[0, 0, 0] : f32 from vector<1x1x1xf32>
    %82 = vector.broadcast %81 : f32 to vector<1x1xf32>
    %83 = arith.addf %50, %82 : vector<1x1xf32>
    %84 = arith.addf %51, %72 : vector<64x64xf32>
    %85 = arith.addf %52, %76 : vector<64x64xf32>
    %86 = vector.extract_strided_slice %5 {offsets = [64, 128], sizes = [64, 64], strides = [1, 1]} : vector<192x192xf32> to vector<64x64xf32>
    %cst_24 = arith.constant -1.000000e+09 : f32
    %87 = vector.broadcast %cst_24 : f32 to vector<64x64xf32>
    %88 = arith.select %16, %86, %87 : vector<64x64xi1>, vector<64x64xf32>
    %89 = vector.shape_cast %88 : vector<64x64xf32> to vector<1x64x64xf32>
    %cst_25 = arith.constant dense<0xFF800000> : vector<1xf32>
    %90 = vector.multi_reduction <maximumf>, %89, %cst_25 [1, 2] : vector<1x64x64xf32> to vector<1xf32>
    %91 = vector.shape_cast %90 : vector<1xf32> to vector<1x1x1xf32>
    %92 = vector.extract %91[0, 0, 0] : f32 from vector<1x1x1xf32>
    %93 = vector.broadcast %92 : f32 to vector<1x1xf32>
    %94 = vector.broadcast %93 : vector<1x1xf32> to vector<64x64xf32>
    %95 = arith.subf %88, %94 : vector<64x64xf32>
    %96 = math.exp %95 : vector<64x64xf32>
    %97 = vector.shape_cast %96 : vector<64x64xf32> to vector<1x64x64xf32>
    %cst_26 = arith.constant dense<0.000000e+00> : vector<1xf32>
    %98 = vector.multi_reduction <add>, %97, %cst_26 [1, 2] : vector<1x64x64xf32> to vector<1xf32>
    %99 = vector.shape_cast %98 : vector<1xf32> to vector<1x1x1xf32>
    %100 = vector.extract %99[0, 0, 0] : f32 from vector<1x1x1xf32>
    %101 = vector.broadcast %100 : f32 to vector<1x1xf32>
    %cst_27 = arith.constant 1.000000e+00 : f32
    %102 = vector.broadcast %cst_27 : f32 to vector<1x1xf32>
    %103 = arith.divf %102, %101 : vector<1x1xf32>
    %104 = vector.broadcast %103 : vector<1x1xf32> to vector<64x64xf32>
    %105 = arith.mulf %96, %104 : vector<64x64xf32>
    %106 = math.log %101 : vector<1x1xf32>
    %107 = arith.addf %93, %106 : vector<1x1xf32>
    %108 = vector.broadcast %107 : vector<1x1xf32> to vector<64x64xf32>
    %109 = arith.subf %88, %108 : vector<64x64xf32>
    %110 = arith.mulf %105, %109 : vector<64x64xf32>
    %111 = vector.shape_cast %110 : vector<64x64xf32> to vector<1x64x64xf32>
    %cst_28 = arith.constant dense<0.000000e+00> : vector<1xf32>
    %112 = vector.multi_reduction <add>, %111, %cst_28 [1, 2] : vector<1x64x64xf32> to vector<1xf32>
    %113 = vector.shape_cast %112 : vector<1xf32> to vector<1x1x1xf32>
    %114 = vector.extract %113[0, 0, 0] : f32 from vector<1x1x1xf32>
    %115 = vector.broadcast %114 : f32 to vector<1x1xf32>
    %116 = arith.addf %83, %115 : vector<1x1xf32>
    %117 = arith.addf %84, %105 : vector<64x64xf32>
    %118 = arith.addf %85, %109 : vector<64x64xf32>
    %119 = vector.extract_strided_slice %5 {offsets = [64, 0], sizes = [64, 64], strides = [1, 1]} : vector<192x192xf32> to vector<64x64xf32>
    %cst_29 = arith.constant -1.000000e+09 : f32
    %120 = vector.broadcast %cst_29 : f32 to vector<64x64xf32>
    %121 = arith.select %16, %119, %120 : vector<64x64xi1>, vector<64x64xf32>
    %122 = vector.shape_cast %121 : vector<64x64xf32> to vector<1x64x64xf32>
    %cst_30 = arith.constant dense<0xFF800000> : vector<1xf32>
    %123 = vector.multi_reduction <maximumf>, %122, %cst_30 [1, 2] : vector<1x64x64xf32> to vector<1xf32>
    %124 = vector.shape_cast %123 : vector<1xf32> to vector<1x1x1xf32>
    %125 = vector.extract %124[0, 0, 0] : f32 from vector<1x1x1xf32>
    %126 = vector.broadcast %125 : f32 to vector<1x1xf32>
    %127 = vector.broadcast %126 : vector<1x1xf32> to vector<64x64xf32>
    %128 = arith.subf %121, %127 : vector<64x64xf32>
    %129 = math.exp %128 : vector<64x64xf32>
    %130 = vector.shape_cast %129 : vector<64x64xf32> to vector<1x64x64xf32>
    %cst_31 = arith.constant dense<0.000000e+00> : vector<1xf32>
    %131 = vector.multi_reduction <add>, %130, %cst_31 [1, 2] : vector<1x64x64xf32> to vector<1xf32>
    %132 = vector.shape_cast %131 : vector<1xf32> to vector<1x1x1xf32>
    %133 = vector.extract %132[0, 0, 0] : f32 from vector<1x1x1xf32>
    %134 = vector.broadcast %133 : f32 to vector<1x1xf32>
    %cst_32 = arith.constant 1.000000e+00 : f32
    %135 = vector.broadcast %cst_32 : f32 to vector<1x1xf32>
    %136 = arith.divf %135, %134 : vector<1x1xf32>
    %137 = vector.broadcast %136 : vector<1x1xf32> to vector<64x64xf32>
    %138 = arith.mulf %129, %137 : vector<64x64xf32>
    %139 = math.log %134 : vector<1x1xf32>
    %140 = arith.addf %126, %139 : vector<1x1xf32>
    %141 = vector.broadcast %140 : vector<1x1xf32> to vector<64x64xf32>
    %142 = arith.subf %121, %141 : vector<64x64xf32>
    %143 = arith.mulf %138, %142 : vector<64x64xf32>
    %144 = vector.shape_cast %143 : vector<64x64xf32> to vector<1x64x64xf32>
    %cst_33 = arith.constant dense<0.000000e+00> : vector<1xf32>
    %145 = vector.multi_reduction <add>, %144, %cst_33 [1, 2] : vector<1x64x64xf32> to vector<1xf32>
    %146 = vector.shape_cast %145 : vector<1xf32> to vector<1x1x1xf32>
    %147 = vector.extract %146[0, 0, 0] : f32 from vector<1x1x1xf32>
    %148 = vector.broadcast %147 : f32 to vector<1x1xf32>
    %149 = arith.addf %116, %148 : vector<1x1xf32>
    %150 = arith.addf %117, %138 : vector<64x64xf32>
    %151 = arith.addf %118, %142 : vector<64x64xf32>
    %152 = vector.extract_strided_slice %5 {offsets = [128, 0], sizes = [64, 64], strides = [1, 1]} : vector<192x192xf32> to vector<64x64xf32>
    %cst_34 = arith.constant -1.000000e+09 : f32
    %153 = vector.broadcast %cst_34 : f32 to vector<64x64xf32>
    %154 = arith.select %16, %152, %153 : vector<64x64xi1>, vector<64x64xf32>
    %155 = vector.shape_cast %154 : vector<64x64xf32> to vector<1x64x64xf32>
    %cst_35 = arith.constant dense<0xFF800000> : vector<1xf32>
    %156 = vector.multi_reduction <maximumf>, %155, %cst_35 [1, 2] : vector<1x64x64xf32> to vector<1xf32>
    %157 = vector.shape_cast %156 : vector<1xf32> to vector<1x1x1xf32>
    %158 = vector.extract %157[0, 0, 0] : f32 from vector<1x1x1xf32>
    %159 = vector.broadcast %158 : f32 to vector<1x1xf32>
    %160 = vector.broadcast %159 : vector<1x1xf32> to vector<64x64xf32>
    %161 = arith.subf %154, %160 : vector<64x64xf32>
    %162 = math.exp %161 : vector<64x64xf32>
    %163 = vector.shape_cast %162 : vector<64x64xf32> to vector<1x64x64xf32>
    %cst_36 = arith.constant dense<0.000000e+00> : vector<1xf32>
    %164 = vector.multi_reduction <add>, %163, %cst_36 [1, 2] : vector<1x64x64xf32> to vector<1xf32>
    %165 = vector.shape_cast %164 : vector<1xf32> to vector<1x1x1xf32>
    %166 = vector.extract %165[0, 0, 0] : f32 from vector<1x1x1xf32>
    %167 = vector.broadcast %166 : f32 to vector<1x1xf32>
    %cst_37 = arith.constant 1.000000e+00 : f32
    %168 = vector.broadcast %cst_37 : f32 to vector<1x1xf32>
    %169 = arith.divf %168, %167 : vector<1x1xf32>
    %170 = vector.broadcast %169 : vector<1x1xf32> to vector<64x64xf32>
    %171 = arith.mulf %162, %170 : vector<64x64xf32>
    %172 = math.log %167 : vector<1x1xf32>
    %173 = arith.addf %159, %172 : vector<1x1xf32>
    %174 = vector.broadcast %173 : vector<1x1xf32> to vector<64x64xf32>
    %175 = arith.subf %154, %174 : vector<64x64xf32>
    %176 = arith.mulf %171, %175 : vector<64x64xf32>
    %177 = vector.shape_cast %176 : vector<64x64xf32> to vector<1x64x64xf32>
    %cst_38 = arith.constant dense<0.000000e+00> : vector<1xf32>
    %178 = vector.multi_reduction <add>, %177, %cst_38 [1, 2] : vector<1x64x64xf32> to vector<1xf32>
    %179 = vector.shape_cast %178 : vector<1xf32> to vector<1x1x1xf32>
    %180 = vector.extract %179[0, 0, 0] : f32 from vector<1x1x1xf32>
    %181 = vector.broadcast %180 : f32 to vector<1x1xf32>
    %182 = arith.addf %149, %181 : vector<1x1xf32>
    %183 = arith.addf %150, %171 : vector<64x64xf32>
    %184 = arith.addf %151, %175 : vector<64x64xf32>
    %185 = vector.extract_strided_slice %5 {offsets = [128, 64], sizes = [64, 64], strides = [1, 1]} : vector<192x192xf32> to vector<64x64xf32>
    %cst_39 = arith.constant -1.000000e+09 : f32
    %186 = vector.broadcast %cst_39 : f32 to vector<64x64xf32>
    %187 = arith.select %16, %185, %186 : vector<64x64xi1>, vector<64x64xf32>
    %188 = vector.shape_cast %187 : vector<64x64xf32> to vector<1x64x64xf32>
    %cst_40 = arith.constant dense<0xFF800000> : vector<1xf32>
    %189 = vector.multi_reduction <maximumf>, %188, %cst_40 [1, 2] : vector<1x64x64xf32> to vector<1xf32>
    %190 = vector.shape_cast %189 : vector<1xf32> to vector<1x1x1xf32>
    %191 = vector.extract %190[0, 0, 0] : f32 from vector<1x1x1xf32>
    %192 = vector.broadcast %191 : f32 to vector<1x1xf32>
    %193 = vector.broadcast %192 : vector<1x1xf32> to vector<64x64xf32>
    %194 = arith.subf %187, %193 : vector<64x64xf32>
    %195 = math.exp %194 : vector<64x64xf32>
    %196 = vector.shape_cast %195 : vector<64x64xf32> to vector<1x64x64xf32>
    %cst_41 = arith.constant dense<0.000000e+00> : vector<1xf32>
    %197 = vector.multi_reduction <add>, %196, %cst_41 [1, 2] : vector<1x64x64xf32> to vector<1xf32>
    %198 = vector.shape_cast %197 : vector<1xf32> to vector<1x1x1xf32>
    %199 = vector.extract %198[0, 0, 0] : f32 from vector<1x1x1xf32>
    %200 = vector.broadcast %199 : f32 to vector<1x1xf32>
    %cst_42 = arith.constant 1.000000e+00 : f32
    %201 = vector.broadcast %cst_42 : f32 to vector<1x1xf32>
    %202 = arith.divf %201, %200 : vector<1x1xf32>
    %203 = vector.broadcast %202 : vector<1x1xf32> to vector<64x64xf32>
    %204 = arith.mulf %195, %203 : vector<64x64xf32>
    %205 = math.log %200 : vector<1x1xf32>
    %206 = arith.addf %192, %205 : vector<1x1xf32>
    %207 = vector.broadcast %206 : vector<1x1xf32> to vector<64x64xf32>
    %208 = arith.subf %187, %207 : vector<64x64xf32>
    %209 = arith.mulf %204, %208 : vector<64x64xf32>
    %210 = vector.shape_cast %209 : vector<64x64xf32> to vector<1x64x64xf32>
    %cst_43 = arith.constant dense<0.000000e+00> : vector<1xf32>
    %211 = vector.multi_reduction <add>, %210, %cst_43 [1, 2] : vector<1x64x64xf32> to vector<1xf32>
    %212 = vector.shape_cast %211 : vector<1xf32> to vector<1x1x1xf32>
    %213 = vector.extract %212[0, 0, 0] : f32 from vector<1x1x1xf32>
    %214 = vector.broadcast %213 : f32 to vector<1x1xf32>
    %215 = arith.addf %182, %214 : vector<1x1xf32>
    %216 = arith.addf %183, %204 : vector<64x64xf32>
    %217 = arith.addf %184, %208 : vector<64x64xf32>
    %cst_44 = arith.constant 6.000000e+00 : f32
    %218 = vector.broadcast %cst_44 : f32 to vector<1x1xf32>
    %219 = arith.mulf %218, %215 : vector<1x1xf32>
    %220 = arith.mulf %216, %217 : vector<64x64xf32>
    %221 = vector.shape_cast %220 : vector<64x64xf32> to vector<1x64x64xf32>
    %cst_45 = arith.constant dense<0.000000e+00> : vector<1xf32>
    %222 = vector.multi_reduction <add>, %221, %cst_45 [1, 2] : vector<1x64x64xf32> to vector<1xf32>
    %223 = vector.shape_cast %222 : vector<1xf32> to vector<1x1x1xf32>
    %224 = vector.extract %223[0, 0, 0] : f32 from vector<1x1x1xf32>
    %225 = vector.broadcast %224 : f32 to vector<1x1xf32>
    %226 = arith.subf %219, %225 : vector<1x1xf32>
    %227 = vector.shape_cast %226 : vector<1x1xf32> to vector<1x1x1xf32>
    %228 = vector.broadcast %227 : vector<1x1x1xf32> to vector<1x8x128xf32>
    %c0_46 = arith.constant 0 : index
    %c0_47 = arith.constant 0 : index
    %c0_48 = arith.constant 0 : index
    %229 = vector.load %arg4[%c0_46, %c0_47, %c0_48] : memref<1x8x128xf32, #tpu.memory_space<vmem>>, vector<1x8x128xf32>
    tpu.vector_store %arg4[%c0_46, %c0_47, %c0_48], %228 {strides = array<i32>} : memref<1x8x128xf32, #tpu.memory_space<vmem>>, vector<1x8x128xf32>,
    return
  }
  func.func @transform_0(%arg0: i32) -> (i32, i32, i32) {
    %c0_i32 = arith.constant 0 : i32
    %c0_i32_0 = arith.constant 0 : i32
    %c0_i32_1 = arith.constant 0 : i32
    return %arg0, %c0_i32, %c0_i32_0 : i32, i32, i32
  }
  func.func @transform_1(%arg0: i32) -> (i32, i32, i32) {
    %c0_i32 = arith.constant 0 : i32
    %c0_i32_0 = arith.constant 0 : i32
    %c0_i32_1 = arith.constant 0 : i32
    return %arg0, %c0_i32, %c0_i32_0 : i32, i32, i32
  }
  func.func @transform_2(%arg0: i32) -> (i32, i32, i32) {
    %c0_i32 = arith.constant 0 : i32
    %c0_i32_0 = arith.constant 0 : i32
    %c0_i32_1 = arith.constant 0 : i32
    return %arg0, %c0_i32, %c0_i32_0 : i32, i32, i32
  }
  func.func @transform_3(%arg0: i32) -> (i32, i32, i32) {
    %c0_i32 = arith.constant 0 : i32
    %c0_i32_0 = arith.constant 0 : i32
    %c0_i32_1 = arith.constant 0 : i32
    return %arg0, %c0_i32, %c0_i32_0 : i32, i32, i32
  }
}

</mosaic_0001>

<bundles_post_ra>
// kernel: tpu_custom_call.1
= control target key start
LH: loop header
LB: loop body
LE: loop exit
PB: predicated region body
PF: predicated region fallthrough
CT: control target
= control target key end

     0   :  { %8 = vsyncpa [#allocation3], 0  ;;  %s3319_s0 = inlined_call_operand.vmem [shape: f32[2,192,64], index: 0, kind: input, shape index: {}]   ;;  %s3320_s1 = inlined_call_operand.vmem [shape: f32[2,64,1], index: 1, kind: input, shape index: {}]   ;;  %s3321_s2 = inlined_call_operand.vmem [shape: f32[2,1,64], index: 2, kind: input, shape index: {}]   ;;  %s3322_s3 = inlined_call_operand.hbm [shape: f32[2,8,128], index: 3, kind: output, shape index: {}]  }
   0x1   :  { %10 = vsyncpa [#allocation3 + $0x1], 0  ;;  %s1984_s12 = smov 0   ;;  %s1986_s13 = smov 0  }
   0x2   :  { %s1988_s14 = smov 0   ;;  %s1990_s15 = smov 0  }
   0x3 LB: > { %s2005_s16 = sadd.s32 4294967295, %s1959_s15   ;;  %s1646_s17 = sadd.s32 4294967294, %s1959_s15   ;;  %s1959_s15 = sphi %s1990_s15, %s3500_s15   ;;  %s1955_s14 = sphi %s1988_s14, %s3499_s14   ;;  %s1951_s13 = sphi %s1986_s13, %s3498_s13   ;;  %s1947_s12 = sphi %s1984_s12, %s3497_s12  }
   0x4   : > { %s2009_s18 = sadd.s32 1, %s1959_s15   ;;  %s101_s19 = sadd.s32 1, %s1955_s14 }
   0x5   : > { %s98_s20 = ssub.s32 %s1959_s15, %s2009_s18  ;;  %p111_p0 = scmp.ne.s32.totalorder %s1955_s14, %s1951_s13 }
   0x6   : > { %p99_p1 = scmp.eq.s32.totalorder %s98_s20, 0  ;;  %p112_p2 = scmp.eq.s32.totalorder %s2005_s16, 1 }
   0x7   : > { %p117_p3 = scmp.ne.s32.totalorder %s1951_s13, %s1947_s12  ;;  %p118_p4 = scmp.eq.s32.totalorder %s1646_s17, 1 }
   0x8   : > { %s2020_s21 = scalar_select %p99_p1, %s1955_s14, %s101_s19  }
   0x9   : > { %p2022_p5 = por %p112_p2, %p111_p0  ;;  %p2026_p6 = por %p118_p4, %p117_p3 }
   0xa   : > { %p1649_p7 = scmp.ge.s32.totalorder %s1959_s15, 1  ;;  %p158_p8 = scmp.lt.s32.totalorder %s1959_s15, 3 }
   0xc   : > { %p159_p9 = pnand %p1649_p7, %p158_p8 }
   0xe   : > { %162 = sbr.rel (%p159_p9) target bundleno = 3579 (0xdfb), region = 32 }
  0x15   : > { %p190_p10 = scmp.lt.s32.totalorder %s2005_s16, 1  ;;  %v1961_v0 = vmov 0   ;;  %vm240_vm0 = vcmask 523264   ;;  %s1962_s6 = smov 64  }
  0x16   : > { %277 = vmatprep.subr.bf16.mxu0 %v1961_v0  ;;  %1671 = vmatprep.subr.bf16.mxu1 %v1961_v0 }
  0x17   : > { %s2036_s24 = scalar_select %p190_p10, %s2005_s16, 1  ;;  %309 = vmatprep.mubr.bf16.mxu0 %v1961_v0  ;;  %369 = vmatprep.mubr.bf16.mxu1 %v1961_v0 }
  0x18   : > { %1775 = vset.pattern.permute.xlu0 %v1961_v0  ;;  %1776 = vset.pattern.permute.xlu1 %v1961_v0 }
  0x19   : > { %s1695_s25 = smul.u32 192, %s2036_s24  ;;  %s1670_s26 = sshll.u32 %s2036_s24, 6 }
  0x1a   : > { %s2047_s29 = scalar_lea.vmem %s3320_s1, %s1670_s26  ;;  %s202_s9 = scalar_lea.vmem %s3321_s2, %s2036_s24 }
  0x1b   : > { %s2052_s5 = scalar_lea.vmem %s3319_s0, %s1695_s25  ;;  %v462_v1 = vld [vmem:[%s2047_s29] sm:$0xff]  ;;  %v463_v2 = vld [vmem:[%s2047_s29 + $0x8] sm:$0xff]  ;;  %v464_v3 = vld [vmem:[%s2047_s29 + $0x10] sm:$0xff] }
  0x1c   : > { %v204_v4 = vld [vmem:[%s2052_s5] sm:$0xff]  ;;  %v205_v5 = vld [vmem:[%s2052_s5 + $0x8] sm:$0xff]  ;;  %vm470_vm1 = vcmp.gt.f32.partialorder %v462_v1, 0.5  ;;  %vm471_vm2 = vcmp.gt.f32.partialorder %v463_v2, 0.5  ;;  %vm472_vm3 = vcmp.gt.f32.partialorder %v464_v3, 0.5  ;;  %v206_v9 = vld [vmem:[%s2052_s5 + $0x10] sm:$0xff] }
  0x1d   : > { %v2059_v6 = vpack.c.bf16 %v205_v5, %v204_v4  ;;  %v480_v7 = vsel %vm470_vm1, 1, %v1961_v0  ;;  %v482_v8 = vsel %vm472_vm3, 1, %v1961_v0  ;;  %v207_v10 = vld [vmem:[%s2052_s5 + $0x18] sm:$0xff]  ;;  %v481_v12 = vsel %vm471_vm2, 1, %v1961_v0  ;;  %v466_v15 = vld [vmem:[%s2047_s29 + $0x20] sm:$0xff]  ;;  %v467_v16 = vld [vmem:[%s2047_s29 + $0x28] sm:$0xff] }
  0x1e   : > { %489 = vperm.xlu0 %1775, %v480_v7   ;;  %495 = vperm.xlu1 %1776, %v482_v8   ;;  %v2069_v13 = vpack.c.bf16 %v207_v10, %v206_v9  ;;  %v465_v14 = vld [vmem:[%s2047_s29 + $0x18] sm:$0xff]  ;;  %vm474_vm5 = vcmp.gt.f32.partialorder %v466_v15, 0.5  ;;  %vm475_vm6 = vcmp.gt.f32.partialorder %v467_v16, 0.5  ;;  %v468_v18 = vld [vmem:[%s2047_s29 + $0x30] sm:$0xff]  ;;  %v208_v19 = vld [vmem:[%s2052_s5 + $0x20] sm:$0xff] }
  0x1f   : > { %v242_v11 = vsel %vm240_vm0, %v2059_v6, 0  ;;  %vm473_vm4 = vcmp.gt.f32.partialorder %v465_v14, 0.5  ;;  %v209_v20 = vld [vmem:[%s2052_s5 + $0x28] sm:$0xff]  ;;  %v484_v22 = vsel %vm474_vm5, 1, %v1961_v0  ;;  %v469_v23 = vld [vmem:[%s2047_s29 + $0x38] sm:$0xff]  ;;  %vm476_vm7 = vcmp.gt.f32.partialorder %v468_v18, 0.5 }
  0x20   : > { %278 = vmatpush1.bf16.xpose.msra.mxu0 %v242_v11  ;;  %1683 = vmatpush1.bf16.xpose.msra.mxu1 %v242_v11  ;;  %v245_v17 = vsel %vm240_vm0, %v2069_v13, 0  ;;  %v483_v21 = vsel %vm473_vm4, 1, %v1961_v0  ;;  %v485_v24 = vsel %vm475_vm6, 1, %v1961_v0  ;;  %v486_v25 = vsel %vm476_vm7, 1, %v1961_v0  ;;  %v210_v29 = vld [vmem:[%s2052_s5 + $0x30] sm:$0xff]  ;;  %v211_v30 = vld [vmem:[%s2052_s5 + $0x38] sm:$0xff] }
  0x21   : > { %279 = vmatprep.subr.bf16.mxu0 %v1961_v0  ;;  %1672 = vmatprep.subr.bf16.mxu1 %v1961_v0  ;;  %v2086_v26 = vpack.c.bf16 %v209_v20, %v208_v19  ;;  %vm477_vm8 = vcmp.gt.f32.partialorder %v469_v23, 0.5  ;;  %v2095_v31 = vpack.c.bf16 %v211_v30, %v210_v29  ;;  %v212_v33 = vld [vmem:[%s2052_s5 + $0x40] sm:$0xff]  ;;  %v213_v34 = vld [vmem:[%s2052_s5 + $0x48] sm:$0xff]  ;;  %v214_v37 = vld [vmem:[%s2052_s5 + $0x50] sm:$0xff] }
  0x22   : > { %492 = vperm.xlu0 %1775, %v481_v12   ;;  %498 = vperm.xlu1 %1776, %v483_v21   ;;  %v487_v27 = vsel %vm477_vm8, 1, %v1961_v0  ;;  %v2103_v35 = vpack.c.bf16 %v213_v34, %v212_v33  ;;  %v215_v38 = vld [vmem:[%s2052_s5 + $0x58] sm:$0xff]  ;;  %v216_v41 = vld [vmem:[%s2052_s5 + $0x60] sm:$0xff]  ;;  %v217_v42 = vld [vmem:[%s2052_s5 + $0x68] sm:$0xff] }
  0x23   : > { %v248_v28 = vsel %vm240_vm0, %v2086_v26, 0  ;;  %v251_v32 = vsel %vm240_vm0, %v2095_v31, 0  ;;  %v2111_v39 = vpack.c.bf16 %v215_v38, %v214_v37  ;;  %v234_v43 = vpack.c.bf16 %v217_v42, %v216_v41  ;;  %v218_v45 = vld [vmem:[%s2052_s5 + $0x70] sm:$0xff]  ;;  %v219_v46 = vld [vmem:[%s2052_s5 + $0x78] sm:$0xff]  ;;  %v220_v49 = vld [vmem:[%s2052_s5 + $0x80] sm:$0xff] }
  0x24   : > { %v254_v36 = vsel %vm240_vm0, %v2103_v35, 0  ;;  %v235_v47 = vpack.c.bf16 %v219_v46, %v218_v45  ;;  %v221_v50 = vld [vmem:[%s2052_s5 + $0x88] sm:$0xff]  ;;  %v222_v53 = vld [vmem:[%s2052_s5 + $0x90] sm:$0xff]  ;;  %v223_v54 = vld [vmem:[%s2052_s5 + $0x98] sm:$0xff] }
  0x25   : > { %v257_v40 = vsel %vm240_vm0, %v2111_v39, 0  ;;  %v260_v44 = vsel %vm240_vm0, %v234_v43, 0  ;;  %v236_v51 = vpack.c.bf16 %v221_v50, %v220_v49  ;;  %v237_v55 = vpack.c.bf16 %v223_v54, %v222_v53  ;;  %v224_v57 = vld [vmem:[%s2052_s5 + $0xa0] sm:$0xff]  ;;  %v225_v58 = vld [vmem:[%s2052_s5 + $0xa8] sm:$0xff]  ;;  %v226_v61 = vld [vmem:[%s2052_s5 + $0xb0] sm:$0xff] }
  0x26   : > { %501 = vperm.xlu0 %1775, %v484_v22   ;;  %504 = vperm.xlu1 %1776, %v485_v24   ;;  %v263_v48 = vsel %vm240_vm0, %v235_v47, 0  ;;  %v238_v59 = vpack.c.bf16 %v225_v58, %v224_v57  ;;  %v227_v62 = vld [vmem:[%s2052_s5 + $0xb8] sm:$0xff] }
  0x27   : > { %v266_v52 = vsel %vm240_vm0, %v236_v51, 0  ;;  %v269_v56 = vsel %vm240_vm0, %v237_v55, 0  ;;  %v239_v63 = vpack.c.bf16 %v227_v62, %v226_v61  ;;  %v521_v61 = vlaneseq }
  0x28   : > { %280 = vmatpush1.bf16.xpose.msra.mxu0 %v245_v17  ;;  %1684 = vmatpush1.bf16.xpose.msra.mxu1 %v245_v17  ;;  %v272_v60 = vsel %vm240_vm0, %v238_v59, 0 }
  0x29   : > { %281 = vmatprep.subr.bf16.mxu0 %v1961_v0  ;;  %1673 = vmatprep.subr.bf16.mxu1 %v1961_v0  ;;  %v275_v1 = vsel %vm240_vm0, %v239_v63, 0 }
  0x2a   : > { %507 = vperm.xlu0 %1775, %v486_v25   ;;  %510 = vperm.xlu1 %1776, %v487_v27  }
  0x30   : > { %282 = vmatpush1.bf16.xpose.msra.mxu0 %v248_v28  ;;  %1685 = vmatpush1.bf16.xpose.msra.mxu1 %v248_v28 }
  0x31   : > { %283 = vmatprep.subr.bf16.mxu0 %v1961_v0  ;;  %1674 = vmatprep.subr.bf16.mxu1 %v1961_v0 }
  0x38   : > { %284 = vmatpush1.bf16.xpose.msra.mxu0 %v251_v32  ;;  %1686 = vmatpush1.bf16.xpose.msra.mxu1 %v251_v32 }
  0x39   : > { %285 = vmatprep.subr.bf16.mxu0 %v1961_v0  ;;  %1675 = vmatprep.subr.bf16.mxu1 %v1961_v0 }
  0x40   : > { %286 = vmatpush1.bf16.xpose.msra.mxu0 %v254_v36  ;;  %1687 = vmatpush1.bf16.xpose.msra.mxu1 %v254_v36 }
  0x41   : > { %287 = vmatprep.subr.bf16.mxu0 %v1961_v0  ;;  %1676 = vmatprep.subr.bf16.mxu1 %v1961_v0 }
  0x48   : > { %288 = vmatpush1.bf16.xpose.msra.mxu0 %v257_v40  ;;  %1688 = vmatpush1.bf16.xpose.msra.mxu1 %v257_v40 }
  0x49   : > { %289 = vmatprep.subr.bf16.mxu0 %v1961_v0  ;;  %1677 = vmatprep.subr.bf16.mxu1 %v1961_v0 }
  0x50   : > { %290 = vmatpush1.bf16.xpose.msra.mxu0 %v260_v44  ;;  %1689 = vmatpush1.bf16.xpose.msra.mxu1 %v260_v44 }
  0x51   : > { %291 = vmatprep.subr.bf16.mxu0 %v1961_v0  ;;  %1678 = vmatprep.subr.bf16.mxu1 %v1961_v0 }
  0x58   : > { %292 = vmatpush1.bf16.xpose.msra.mxu0 %v263_v48  ;;  %1690 = vmatpush1.bf16.xpose.msra.mxu1 %v263_v48 }
  0x59   : > { %293 = vmatprep.subr.bf16.mxu0 %v1961_v0  ;;  %1679 = vmatprep.subr.bf16.mxu1 %v1961_v0 }
  0x60   : > { %294 = vmatpush1.bf16.xpose.msra.mxu0 %v266_v52  ;;  %1691 = vmatpush1.bf16.xpose.msra.mxu1 %v266_v52 }
  0x61   : > { %295 = vmatprep.subr.bf16.mxu0 %v1961_v0  ;;  %1680 = vmatprep.subr.bf16.mxu1 %v1961_v0 }
  0x68   : > { %296 = vmatpush1.bf16.xpose.msra.mxu0 %v269_v56  ;;  %1692 = vmatpush1.bf16.xpose.msra.mxu1 %v269_v56 }
  0x69   : > { %297 = vmatprep.subr.bf16.mxu0 %v1961_v0  ;;  %1681 = vmatprep.subr.bf16.mxu1 %v1961_v0 }
  0x70   : > { %298 = vmatpush1.bf16.xpose.msra.mxu0 %v272_v60  ;;  %1693 = vmatpush1.bf16.xpose.msra.mxu1 %v272_v60 }
  0x71   : > { %299 = vmatprep.subr.bf16.mxu0 %v1961_v0  ;;  %1682 = vmatprep.subr.bf16.mxu1 %v1961_v0 }
  0x78   : > { %300 = vmatpush1.bf16.xpose.msra.mxu0 %v275_v1  ;;  %1694 = vmatpush1.bf16.xpose.msra.mxu1 %v275_v1 }
  0x7f   : > { %1654 = vmatmul.mubr.msk.bf16.vlgmr.msra.gmra.mrb[0].mxu0 %vm240_vm0, %v2059_v6  ;;  %1660 = vmatmul.mubr.msk.bf16.vlgmr.msra.gmra.mrb[0].mxu1 %vm240_vm0, %v234_v43 }
  0x80   : > { %319 = vmatprep.mubr.bf16.mxu0 %v1961_v0  ;;  %379 = vmatprep.mubr.bf16.mxu1 %v1961_v0 }
  0x87   : > { %1655 = vmatmul.mubr.msk.bf16.gmra.mrb[4].mxu0 %vm240_vm0, %v2069_v13  ;;  %1661 = vmatmul.mubr.msk.bf16.gmra.mrb[4].mxu1 %vm240_vm0, %v235_v47 }
  0x88   : > { %329 = vmatprep.mubr.bf16.mxu0 %v1961_v0  ;;  %389 = vmatprep.mubr.bf16.mxu1 %v1961_v0 }
  0x8f   : > { %1656 = vmatmul.mubr.msk.bf16.gmra.mrb[8].mxu0 %vm240_vm0, %v2086_v26  ;;  %1662 = vmatmul.mubr.msk.bf16.gmra.mrb[8].mxu1 %vm240_vm0, %v236_v51 }
  0x90   : > { %339 = vmatprep.mubr.bf16.mxu0 %v1961_v0  ;;  %397 = vmatprep.mubr.bf16.mxu1 %v1961_v0 }
  0x97   : > { %1657 = vmatmul.mubr.msk.bf16.gmra.mrb[12].mxu0 %vm240_vm0, %v2095_v31  ;;  %1663 = vmatmul.mubr.msk.bf16.gmra.mrb[12].mxu1 %vm240_vm0, %v237_v55 }
  0x98   : > { %349 = vmatprep.mubr.bf16.mxu0 %v1961_v0  ;;  %405 = vmatprep.mubr.bf16.mxu1 %v1961_v0 }
  0x9d   : > { %v496_v58 = vpop.permute.xlu1 %495 }
  0x9e   : > { %vm514_vm15 = vcmp.eq.s32.totalorder %v496_v58, 1 }
  0x9f   : > { %1658 = vmatmul.mubr.msk.bf16.gmra.mrb[16].mxu0 %vm240_vm0, %v2103_v35  ;;  %1664 = vmatmul.mubr.msk.bf16.gmra.mrb[16].mxu1 %vm240_vm0, %v238_v59  ;;  %v490_v59 = vpop.permute.xlu0 %489 }
  0xa0   : > { %359 = vmatprep.mubr.bf16.mxu0 %v1961_v0  ;;  %413 = vmatprep.mubr.bf16.mxu1 %v1961_v0  ;;  %vm512_vm11 = vcmp.eq.s32.totalorder %v490_v59, 1 }
  0xa1   : > { %v499_v60 = vpop.permute.xlu1 %498 }
  0xa2   : > { %vm515_vm3 = vcmp.eq.s32.totalorder %v499_v60, 1 }
  0xa3   : > { %v493_v62 = vpop.permute.xlu0 %492 }
  0xa4   : > { %vm513_vm12 = vcmp.eq.s32.totalorder %v493_v62, 1  ;;  %v3410_v62 = vmov 0 }
  0xa5   : > { %v505_v1 = vpop.permute.xlu1 %504 }
  0xa6   : > { %vm517_vm13 = vcmp.eq.s32.totalorder %v505_v1, 1 }
  0xa7   : > { %1659 = vmatmul.mubr.msk.bf16.gmra.mrb[20].mxu0 %vm240_vm0, %v2111_v39  ;;  %1665 = vmatmul.mubr.msk.bf16.gmra.mrb[20].mxu1 %vm240_vm0, %v239_v63  ;;  %v478_v63 = vld [vmem:[%s202_s9] sm:$0x1]  ;;  %s187_s9 = sand.u32 1, %s1951_s13  }
  0xa8   : > { %vm479_vm9 = vcmp.gt.f32.partialorder %v478_v63, 0.5 }
 0x152   : > { %v311_v2 = vpop.f32.mrb[0].mxu0  ;;  %v2174_v3 = vpop.f32.mrb[0].mxu1 }
 0x153   : > { %v422_v4 = vmul.f32 0.125, %v311_v2  ;;  %v2176_v5 = vpop.f32.mrb[1].mxu0  ;;  %v2178_v6 = vpop.f32.mrb[1].mxu1  ;;  %v522_v2 = vshrl.u32 %v521_v61, 7 }
 0x154   : > { %v315_v7 = vpop.f32.mrb[2].mxu0  ;;  %v2180_v8 = vpop.f32.mrb[2].mxu1 }
 0x155   : > { %v424_v9 = vmul.f32 0.125, %v315_v7  ;;  %542 = vrot.lane.b32.xlu0 %v422_v4, %s1962_s6  ;;  %v2183_v10 = vpop.f32.mrb[3].mxu0  ;;  %v2185_v11 = vpop.f32.mrb[3].mxu1 }
 0x156   : > { %v502_v4 = vpop.permute.xlu0 %501  ;;  %v511_v7 = vpop.permute.xlu1 %510 }
 0x157   : > { %544 = vrot.lane.b32.xlu1 %v424_v9, %s1962_s6  ;;  %v523_v9 = vsub.s32 0, %v522_v2  ;;  %vm516_vm2 = vcmp.eq.s32.totalorder %v502_v4, 1 }
 0x15a   : > { %v321_v12 = vpop.f32.mrb[4].mxu0  ;;  %v2188_v13 = vpop.f32.mrb[4].mxu1 }
 0x15b   : > { %v426_v14 = vmul.f32 0.125, %v321_v12  ;;  %v2190_v15 = vpop.f32.mrb[5].mxu0  ;;  %v2192_v16 = vpop.f32.mrb[5].mxu1  ;;  %v520_v12 = vsel %vm479_vm9, 1, %v1961_v0  ;;  %v3392_v0 = vmov 0  ;;  %vm519_vm9 = vcmp.eq.s32.totalorder %v511_v7, 1 }
 0x15c   : > { %v325_v17 = vpop.f32.mrb[6].mxu0  ;;  %v2194_v18 = vpop.f32.mrb[6].mxu1 }
 0x15d   : > { %v428_v19 = vmul.f32 0.125, %v325_v17  ;;  %546 = vrot.lane.b32.xlu0 %v426_v14, %s1962_s6  ;;  %v2197_v20 = vpop.f32.mrb[7].mxu0  ;;  %v2199_v21 = vpop.f32.mrb[7].mxu1 }
 0x15e   : > { %v508_v14 = vpop.permute.xlu0 %507 }
 0x15f   : > { %548 = vrot.lane.b32.xlu1 %v428_v19, %s1962_s6  ;;  %v524_v19 = vrot.slane %v520_v12, %v523_v9  ;;  %vm518_vm6 = vcmp.eq.s32.totalorder %v508_v14, 1 }
 0x161   : > { %vm525_vm10 = vcmp.eq.s32.totalorder %v524_v19, 1 }
 0x162   : > { %v331_v22 = vpop.f32.mrb[8].mxu0  ;;  %v2202_v23 = vpop.f32.mrb[8].mxu1  ;;  %vm2252_vm14 = vmand %vm512_vm11, %vm525_vm10 }
 0x163   : > { %3380 = vst [vmem:[#allocation5_spill] sm:$0xff] %v2202_v23  ;;  %v430_v24 = vmul.f32 0.125, %v331_v22  ;;  %v2204_v25 = vpop.f32.mrb[9].mxu0  ;;  %v393_v26 = vpop.f32.mrb[9].mxu1  ;;  %vm2257_vm1 = vmand %vm513_vm12, %vm525_vm10 }
 0x164   : > { %v335_v27 = vpop.f32.mrb[10].mxu0  ;;  %v2206_v28 = vpop.f32.mrb[10].mxu1  ;;  %v3393_v0 = vsel %vm2257_vm1, 4294967295, %v3392_v0  ;;  %vm2262_vm4 = vmand %vm517_vm13, %vm525_vm10 }
 0x165   : > { %3381 = vst [vmem:[#allocation6_spill] sm:$0xff] %v2206_v28  ;;  %v432_v29 = vmul.f32 0.125, %v335_v27  ;;  %550 = vrot.lane.b32.xlu0 %v430_v24, %s1962_s6  ;;  %v2209_v30 = vpop.f32.mrb[11].mxu0  ;;  %v396_v31 = vpop.f32.mrb[11].mxu1  ;;  %v3389_v27 = vmov 0  ;;  %3394 = vst [vmem:[#allocation15_spill] sm:$0xff] %v3393_v0 }
 0x166   : > { %v3390_v27 = vsel %vm2252_vm14, 4294967295, %v3389_v27  ;;  %v3395_v31 = vmov 0  ;;  %vm2267_vm5 = vmand %vm514_vm15, %vm525_vm10 }
 0x167   : > { %552 = vrot.lane.b32.xlu1 %v432_v29, %s1962_s6  ;;  %3391 = vst [vmem:[#allocation14_spill] sm:$0xff] %v3390_v27  ;;  %v3396_v31 = vsel %vm2262_vm4, 4294967295, %v3395_v31  ;;  %vm2276_vm7 = vmand %vm516_vm2, %vm525_vm10 }
 0x168   : > { %3397 = vst [vmem:[#allocation16_spill] sm:$0xff] %v3396_v31  ;;  %vm2281_vm8 = vmand %vm515_vm3, %vm525_vm10 }
 0x169   : > { %vm2294_vm11 = vmand %vm518_vm6, %vm525_vm10 }
 0x16a   : > { %v341_v32 = vpop.f32.mrb[12].mxu0  ;;  %v2212_v33 = vpop.f32.mrb[12].mxu1  ;;  %vm2317_vm12 = vmand %vm519_vm9, %vm525_vm10 }
 0x16b   : > { %3382 = vst [vmem:[#allocation7_spill] sm:$0xff] %v2212_v33  ;;  %v434_v34 = vmul.f32 0.125, %v341_v32  ;;  %v2214_v35 = vpop.f32.mrb[13].mxu0  ;;  %v401_v36 = vpop.f32.mrb[13].mxu1  ;;  %v3411_v62 = vsel %vm2317_vm12, 4294967295, %v3410_v62 }
 0x16c   : > { %v345_v37 = vpop.f32.mrb[14].mxu0  ;;  %v2216_v38 = vpop.f32.mrb[14].mxu1  ;;  %3412 = vst [vmem:[#allocation21_spill] sm:$0xff] %v3411_v62 }
 0x16d   : > { %3383 = vst [vmem:[#allocation8_spill] sm:$0xff] %v2216_v38  ;;  %v436_v39 = vmul.f32 0.125, %v345_v37  ;;  %554 = vrot.lane.b32.xlu0 %v434_v34, %s1962_s6  ;;  %v2219_v40 = vpop.f32.mrb[15].mxu0  ;;  %v404_v41 = vpop.f32.mrb[15].mxu1  ;;  %v3398_v34 = vmov 0  ;;  %v3401_v37 = vmov 0 }
 0x16e   : > { %v3399_v34 = vsel %vm2267_vm5, 4294967295, %v3398_v34  ;;  %v3402_v37 = vsel %vm2276_vm7, 4294967295, %v3401_v37 }
 0x16f   : > { %556 = vrot.lane.b32.xlu1 %v436_v39, %s1962_s6  ;;  %3400 = vst [vmem:[#allocation17_spill] sm:$0xff] %v3399_v34  ;;  %3403 = vst [vmem:[#allocation18_spill] sm:$0xff] %v3402_v37  ;;  %v3404_v39 = vmov 0 }
 0x170   : > { %v3405_v39 = vsel %vm2281_vm8, 4294967295, %v3404_v39 }
 0x171   : > { %3406 = vst [vmem:[#allocation19_spill] sm:$0xff] %v3405_v39 }
 0x172   : > { %v2222_v42 = vpop.f32.mrb[16].mxu0  ;;  %v2224_v43 = vpop.f32.mrb[16].mxu1 }
 0x173   : > { %3384 = vst [vmem:[#allocation9_spill] sm:$0xff] %v2224_v43  ;;  %v2226_v44 = vpop.f32.mrb[17].mxu0  ;;  %v409_v45 = vpop.f32.mrb[17].mxu1 }
 0x174   : > { %v2228_v46 = vpop.f32.mrb[18].mxu0  ;;  %v2230_v47 = vpop.f32.mrb[18].mxu1 }
 0x175   : > { %3385 = vst [vmem:[#allocation10_spill] sm:$0xff] %v2230_v47  ;;  %v2232_v48 = vpop.f32.mrb[19].mxu0  ;;  %v412_v49 = vpop.f32.mrb[19].mxu1 }
 0x176   : > { %v3407_v49 = vmov 0 }
 0x177   : > { %v3408_v49 = vsel %vm2294_vm11, 4294967295, %v3407_v49 }
 0x178   : > { %3409 = vst [vmem:[#allocation20_spill] sm:$0xff] %v3408_v49 }
 0x17a   : > { %v2234_v50 = vpop.f32.mrb[20].mxu0  ;;  %v2236_v51 = vpop.f32.mrb[20].mxu1 }
 0x17b   : > { %3386 = vst [vmem:[#allocation11_spill] sm:$0xff] %v2236_v51  ;;  %v2238_v52 = vpop.f32.mrb[21].mxu0  ;;  %v417_v53 = vpop.f32.mrb[21].mxu1 }
 0x17c   : > { %v2240_v54 = vpop.f32.mrb[22].mxu0  ;;  %v2242_v55 = vpop.f32.mrb[22].mxu1 }
 0x17d   : > { %3387 = vst [vmem:[#allocation12_spill] sm:$0xff] %v2240_v54  ;;  %3388 = vst [vmem:[#allocation13_spill] sm:$0xff] %v2242_v55  ;;  %v2244_v56 = vpop.f32.mrb[23].mxu0  ;;  %v420_v57 = vpop.f32.mrb[23].mxu1 }
 0x1c7   : > { %v543_v22 = vpop.permute.xlu0 %542 }
 0x1c8   : > { %v2300_v53 = vsel %vm2252_vm14, %v543_v22, -1e+09 }
 0x1c9   : > { %v545_v17 = vpop.permute.xlu1 %544  ;;  %v574_v12 = vsel %vm240_vm0, %v2300_v53, -inf }
 0x1ca   : > { %v2287_v41 = vsel %vm2257_vm1, %v545_v17, -1e+09 }
 0x1cb   : > { %v575_v63 = vsel %vm240_vm0, %v2287_v41, -inf }
 0x1cf   : > { %v547_v26 = vpop.permute.xlu0 %546 }
 0x1d0   : > { %v2306_v59 = vsel %vm2267_vm5, %v547_v26, -1e+09 }
 0x1d1   : > { %v549_v24 = vpop.permute.xlu1 %548  ;;  %v576_v14 = vsel %vm240_vm0, %v2306_v59, -inf }
 0x1d2   : > { %v2310_v60 = vsel %vm2281_vm8, %v549_v24, -1e+09 }
 0x1d3   : > { %v577_v17 = vsel %vm240_vm0, %v2310_v60, -inf }
 0x1d7   : > { %v551_v32 = vpop.permute.xlu0 %550 }
 0x1d8   : > { %v2291_v45 = vsel %vm2276_vm7, %v551_v32, -1e+09 }
 0x1d9   : > { %v553_v29 = vpop.permute.xlu1 %552  ;;  %v578_v1 = vsel %vm240_vm0, %v2291_v45, -inf }
 0x1da   : > { %v2273_v36 = vsel %vm2262_vm4, %v553_v29, -1e+09  ;;  %v579_v22 = vmax.f32 %v574_v12, %v578_v1 }
 0x1db   : > { %v580_v57 = vsel %vm240_vm0, %v2273_v36, -inf }
 0x1dc   : > { %v581_v7 = vmax.f32 %v575_v63, %v580_v57 }
 0x1de   : > { %v586_v29 = vmax.f32 %v579_v22, %v581_v7 }
 0x1df   : > { %v555_v58 = vpop.permute.xlu0 %554 }
 0x1e0   : > { %v2314_v61 = vsel %vm2294_vm11, %v555_v58, -1e+09 }
 0x1e1   : > { %v582_v2 = vsel %vm240_vm0, %v2314_v61, -inf  ;;  %v557_v4 = vpop.permute.xlu1 %556 }
 0x1e2   : > { %v2329_v9 = vsel %vm2317_vm12, %v557_v4, -1e+09  ;;  %v583_v24 = vmax.f32 %v576_v14, %v582_v2 }
 0x1e3   : > { %v584_v19 = vsel %vm240_vm0, %v2329_v9, -inf }
 0x1e4   : > { %v585_v26 = vmax.f32 %v577_v17, %v584_v19 }
 0x1e6   : > { %v587_v32 = vmax.f32 %v583_v24, %v585_v26 }
 0x1e8   : > { %v588_v57 = vmax.f32 %v586_v29, %v587_v32 }
 0x1ea   : > { %589 = vmax.xlane.f32.xlu0 %v588_v57 }
 0x277   : > { %v590_v58 = vpop.xlane.xlu0 %589 }
 0x278   : > { %v591_v63 = vrot.slane %v590_v58, 4 }
 0x27a   : > { %v592_v4 = vmax.f32 %v590_v58, %v591_v63 }
 0x27c   : > { %v593_v55 = vrot.slane %v592_v4, 2 }
 0x27e   : > { %v594_v51 = vmax.f32 %v592_v4, %v593_v55 }
 0x280   : > { %v595_v47 = vrot.slane %v594_v51, 1 }
 0x282   : > { %v596_v43 = vmax.f32 %v594_v51, %v595_v47 }
 0x284   : > { %1696 = vpush %v596_v43 }
 0x2b5   : > { %s1697_s10 = spop %1696 }
 0x2b6   : > { %v2339_v38 = vstv %s1697_s10 }
 0x2b7   : > { %v599_v1 = vsub.f32 %v2300_v53, %v2339_v38  ;;  %v600_v2 = vsub.f32 %v2287_v41, %v2339_v38  ;;  %v601_v7 = vsub.f32 %v2306_v59, %v2339_v38  ;;  %v602_v12 = vsub.f32 %v2310_v60, %v2339_v38 }
 0x2b8   : > { %v603_v55 = vsub.f32 %v2291_v45, %v2339_v38  ;;  %v604_v17 = vsub.f32 %v2273_v36, %v2339_v38  ;;  %v605_v19 = vsub.f32 %v2314_v61, %v2339_v38  ;;  %v606_v24 = vsub.f32 %v2329_v9, %v2339_v38 }
 0x2b9   : > { %v607_v47 = vmul.f32 1.442695, %v599_v1  ;;  %v609_v43 = vmul.f32 1.442695, %v600_v2  ;;  %v611_v51 = vmul.f32 1.442695, %v601_v7 }
 0x2ba   : > { %v613_v14 = vmul.f32 1.442695, %v602_v12  ;;  %v615_v22 = vmul.f32 1.442695, %v603_v55  ;;  %v617_v26 = vmul.f32 1.442695, %v604_v17 }
 0x2bb   : > { %1777 = vpow2.f32 %v607_v47  ;;  %v619_v29 = vmul.f32 1.442695, %v605_v19  ;;  %v621_v32 = vmul.f32 1.442695, %v606_v24 }
 0x2bc   : > { %1779 = vpow2.f32 %v609_v43 }
 0x2bd   : > { %1781 = vpow2.f32 %v611_v51 }
 0x2be   : > { %1783 = vpow2.f32 %v613_v14 }
 0x2bf   : > { %1785 = vpow2.f32 %v615_v22 }
 0x2c0   : > { %1787 = vpow2.f32 %v617_v26 }
 0x2c1   : > { %1789 = vpow2.f32 %v619_v29 }
 0x2c2   : > { %1791 = vpow2.f32 %v621_v32 }
 0x2c5   : > { %v1778_v57 = vpop.eup %1777 }
 0x2c6   : > { %v1780_v58 = vpop.eup %1779  ;;  %v623_v63 = vsel %vm240_vm0, %v1778_v57, 0.0 }
 0x2c7   : > { %v1782_v4 = vpop.eup %1781  ;;  %v624_v1 = vsel %vm240_vm0, %v1780_v58, 0.0 }
 0x2c8   : > { %v1784_v2 = vpop.eup %1783  ;;  %v625_v7 = vadd.f32 %v624_v1, %v623_v63  ;;  %v626_v12 = vsel %vm240_vm0, %v1782_v4, 0.0 }
 0x2c9   : > { %v1786_v55 = vpop.eup %1785  ;;  %v628_v43 = vsel %vm240_vm0, %v1784_v2, 0.0 }
 0x2ca   : > { %v627_v47 = vadd.f32 %v626_v12, %v625_v7  ;;  %v1788_v51 = vpop.eup %1787  ;;  %v630_v17 = vsel %vm240_vm0, %v1786_v55, 0.0 }
 0x2cb   : > { %v1790_v19 = vpop.eup %1789  ;;  %v632_v24 = vsel %vm240_vm0, %v1788_v51, 0.0 }
 0x2cc   : > { %v629_v14 = vadd.f32 %v628_v43, %v627_v47  ;;  %v2363_v26 = vpop.eup %1791  ;;  %v634_v32 = vsel %vm240_vm0, %v1790_v19, 0.0 }
 0x2cd   : > { %v636_v1 = vsel %vm240_vm0, %v2363_v26, 0.0 }
 0x2ce   : > { %v631_v22 = vadd.f32 %v630_v17, %v629_v14 }
 0x2d0   : > { %v633_v29 = vadd.f32 %v632_v24, %v631_v22 }
 0x2d2   : > { %v635_v63 = vadd.f32 %v634_v32, %v633_v29 }
 0x2d4   : > { %v637_v7 = vadd.f32 %v636_v1, %v635_v63 }
 0x2d6   : > { %638 = vadd.xlane.f32.xlu1 %v637_v7 }
 0x363   : > { %v639_v12 = vpop.xlane.xlu1 %638 }
 0x364   : > { %v640_v33 = vrot.slane %v639_v12, 4 }
 0x366   : > { %v641_v47 = vadd.f32 %v640_v33, %v639_v12 }
 0x368   : > { %v642_v43 = vrot.slane %v641_v47, 2 }
 0x36a   : > { %v643_v28 = vadd.f32 %v642_v43, %v641_v47 }
 0x36c   : > { %v644_v23 = vrot.slane %v643_v28, 1 }
 0x36e   : > { %v645_v14 = vadd.f32 %v644_v23, %v643_v28 }
 0x370   : > { %1698 = vpush %v645_v14  ;;  %v427_v14 = vmul.f32 0.125, %v2190_v15  ;;  %v431_v15 = vmul.f32 0.125, %v2204_v25 }
 0x3a1   : > { %s1699_s11 = spop %1698 }
 0x3a2   : > { %v647_v17 = vstv %s1699_s11  ;;  %s1650_s11 = sshll.u32 %s187_s9, 3 }
 0x3a3   : > { %1793 = vlog2.f32 %v647_v17 }
 0x3a4   : > { %1795 = vrcp.f32 %v647_v17 }
 0x3ad   : > { %v1794_v22 = vpop.eup %1793 }
 0x3ae   : > { %v1796_v24 = vpop.eup %1795  ;;  %v659_v29 = vmul.f32 0.6931472, %v1794_v22 }
 0x3af   : > { %v2369_v54 = vmul.f32 %v1796_v24, %v1778_v57  ;;  %v2371_v63 = vmul.f32 %v1796_v24, %v1780_v58  ;;  %v2373_v1 = vmul.f32 %v1796_v24, %v1782_v4  ;;  %v2388_v57 = vmul.f32 %v1796_v24, %v1784_v2 }
 0x3b0   : > { %v660_v32 = vadd.f32 %v659_v29, %v2339_v38  ;;  %v423_v38 = vmul.f32 0.125, %v2176_v5  ;;  %v425_v4 = vmul.f32 0.125, %v2183_v10  ;;  %v437_v5 = vmul.f32 0.125, %v2219_v40 }
 0x3b1   : > { %3413 = vst [vmem:[#allocation22_spill] sm:$0xff] %v2369_v54  ;;  %3414 = vst [vmem:[#allocation23_spill] sm:$0xff] %v2371_v63  ;;  %v2402_v2 = vmul.f32 %v1796_v24, %v1786_v55  ;;  %v433_v10 = vmul.f32 0.125, %v2209_v30  ;;  %v2414_v40 = vmul.f32 %v1796_v24, %v1788_v51  ;;  %v2431_v51 = vmul.f32 %v1796_v24, %v1790_v19 }
 0x3b2   : > { %3415 = vst [vmem:[#allocation24_spill] sm:$0xff] %v2373_v1  ;;  %v2376_v33 = vsub.f32 %v2300_v53, %v660_v32  ;;  %v2379_v23 = vsub.f32 %v2287_v41, %v660_v32  ;;  %v2382_v28 = vsub.f32 %v2306_v59, %v660_v32  ;;  %v2385_v7 = vsub.f32 %v2310_v60, %v660_v32 }
 0x3b3   : > { %3420 = vst [vmem:[#allocation29_spill] sm:$0xff] %v2388_v57  ;;  %v2391_v58 = vsub.f32 %v2291_v45, %v660_v32  ;;  %v429_v60 = vmul.f32 0.125, %v2197_v20  ;;  %3422 = vst [vmem:[#allocation31_spill] sm:$0xff] %v2402_v2  ;;  %v2405_v45 = vsub.f32 %v2273_v36, %v660_v32  ;;  %v435_v20 = vmul.f32 0.125, %v2214_v35 }
 0x3b4   : > { %3416 = vst [vmem:[#allocation25_spill] sm:$0xff] %v2376_v33  ;;  %3417 = vst [vmem:[#allocation26_spill] sm:$0xff] %v2379_v23  ;;  %v669_v53 = vmul.f32 %v2376_v33, %v2369_v54  ;;  %v670_v41 = vmul.f32 %v2379_v23, %v2371_v63  ;;  %v671_v59 = vmul.f32 %v2382_v28, %v2373_v1  ;;  %v2429_v30 = vsel %vm2317_vm12, %v437_v5, -1e+09 }
 0x3b5   : > { %3418 = vst [vmem:[#allocation27_spill] sm:$0xff] %v2382_v28  ;;  %3419 = vst [vmem:[#allocation28_spill] sm:$0xff] %v2385_v7  ;;  %v672_v12 = vmul.f32 %v2385_v7, %v2388_v57  ;;  %v2417_v55 = vsub.f32 %v2314_v61, %v660_v32  ;;  %v673_v36 = vmul.f32 %v2391_v58, %v2402_v2  ;;  %v2424_v29 = vsel %vm2281_vm8, %v429_v60, -1e+09 }
 0x3b6   : > { %3421 = vst [vmem:[#allocation30_spill] sm:$0xff] %v2391_v58  ;;  %3423 = vst [vmem:[#allocation32_spill] sm:$0xff] %v2405_v45  ;;  %v677_v47 = vsel %vm240_vm0, %v669_v53, 0.0  ;;  %v678_v43 = vsel %vm240_vm0, %v670_v41, 0.0  ;;  %v680_v22 = vsel %vm240_vm0, %v671_v59, 0.0  ;;  %v2434_v61 = vsub.f32 %v2329_v9, %v660_v32 }
 0x3b7   : > { %v679_v17 = vadd.f32 %v678_v43, %v677_v47  ;;  %3424 = vst [vmem:[#allocation33_spill] sm:$0xff] %v2414_v40  ;;  %3425 = vst [vmem:[#allocation34_spill] sm:$0xff] %v2417_v55  ;;  %v674_v53 = vmul.f32 %v2405_v45, %v2414_v40  ;;  %v682_v41 = vsel %vm240_vm0, %v672_v12, 0.0  ;;  %v2441_v59 = vsel %vm2257_vm1, %v425_v4, -1e+09 }
 0x3b8   : > { %3426 = vst [vmem:[#allocation35_spill] sm:$0xff] %v2431_v51  ;;  %3427 = vst [vmem:[#allocation36_spill] sm:$0xff] %v2434_v61  ;;  %v2445_v25 = vsel %vm2262_vm4, %v433_v10, -1e+09  ;;  %v2449_v19 = vsel %vm2294_vm11, %v435_v20, -1e+09  ;;  %v2454_v32 = vmul.f32 %v1796_v24, %v2363_v26  ;;  %v675_v5 = vmul.f32 %v2417_v55, %v2431_v51 }
 0x3b9   : > { %v681_v35 = vadd.f32 %v680_v22, %v679_v17  ;;  %v737_v9 = vsel %vm240_vm0, %v2429_v30, -inf  ;;  %v684_v4 = vsel %vm240_vm0, %v673_v36, 0.0  ;;  %v2461_v12 = vsel %vm2267_vm5, %v427_v14, -1e+09 }
 0x3ba   : > { %3428 = vst [vmem:[#allocation37_spill] sm:$0xff] %v2454_v32  ;;  %v730_v47 = vsel %vm240_vm0, %v2424_v29, -inf  ;;  %v2467_v43 = vsel %vm2276_vm7, %v431_v15, -1e+09  ;;  %v733_v26 = vsel %vm240_vm0, %v2445_v25, -inf  ;;  %v735_v24 = vsel %vm240_vm0, %v2449_v19, -inf }
 0x3bb   : > { %v683_v60 = vadd.f32 %v682_v41, %v681_v35  ;;  %v676_v20 = vmul.f32 %v2434_v61, %v2454_v32  ;;  %v686_v14 = vsel %vm240_vm0, %v674_v53, 0.0  ;;  %v2478_v17 = vsel %vm2252_vm14, %v423_v38, -1e+09 }
 0x3bc   : > { %v738_v22 = vmax.f32 %v730_v47, %v737_v9  ;;  %v728_v15 = vsel %vm240_vm0, %v2441_v59, -inf  ;;  %v729_v35 = vsel %vm240_vm0, %v2461_v12, -inf  ;;  %v731_v41 = vsel %vm240_vm0, %v2467_v43, -inf }
 0x3bd   : > { %v685_v10 = vadd.f32 %v684_v4, %v683_v60  ;;  %v688_v60 = vsel %vm240_vm0, %v675_v5, 0.0  ;;  %v734_v61 = vmax.f32 %v728_v15, %v733_v26  ;;  %v736_v53 = vmax.f32 %v729_v35, %v735_v24 }
 0x3be   : > { %v727_v38 = vsel %vm240_vm0, %v2478_v17, -inf }
 0x3bf   : > { %v687_v36 = vadd.f32 %v686_v14, %v685_v10  ;;  %v690_v10 = vsel %vm240_vm0, %v676_v20, 0.0  ;;  %v732_v47 = vmax.f32 %v727_v38, %v731_v41  ;;  %v740_v14 = vmax.f32 %v736_v53, %v738_v22 }
 0x3c1   : > { %v689_v4 = vadd.f32 %v688_v60, %v687_v36  ;;  %v739_v55 = vmax.f32 %v732_v47, %v734_v61 }
 0x3c3   : > { %v691_v9 = vadd.f32 %v690_v10, %v689_v4  ;;  %v741_v45 = vmax.f32 %v739_v55, %v740_v14 }
 0x3c5   : > { %692 = vadd.xlane.f32.xlu0 %v691_v9 }
 0x3c9   : > { %742 = vmax.xlane.f32.xlu0 %v741_v45 }
 0x452   : > { %v693_v58 = vpop.xlane.xlu0 %692 }
 0x453   : > { %v694_v7 = vrot.slane %v693_v58, 4 }
 0x455   : > { %v695_v28 = vadd.f32 %v694_v7, %v693_v58 }
 0x456   : > { %v743_v23 = vpop.xlane.xlu0 %742 }
 0x457   : > { %v696_v5 = vrot.slane %v695_v28, 2  ;;  %v744_v36 = vrot.slane %v743_v23, 4 }
 0x459   : > { %v745_v26 = vmax.f32 %v743_v23, %v744_v36  ;;  %v697_v24 = vadd.f32 %v696_v5, %v695_v28  ;;  %v447_v36 = vmul.f32 0.125, %v2178_v6 }
 0x45b   : > { %v746_v15 = vrot.slane %v745_v26, 2  ;;  %v698_v35 = vrot.slane %v697_v24, 1 }
 0x45d   : > { %v699_v60 = vadd.f32 %v698_v35, %v697_v24  ;;  %v747_v33 = vmax.f32 %v745_v26, %v746_v15  ;;  %v449_v26 = vmul.f32 0.125, %v2185_v11  ;;  %v451_v24 = vmul.f32 0.125, %v2192_v16 }
 0x45e   : > { %v453_v35 = vmul.f32 0.125, %v2199_v21 }
 0x45f   : > { %1700 = vpush %v699_v60  ;;  %v748_v20 = vrot.slane %v747_v33, 1  ;;  %v439_v60 = vmul.f32 0.125, %v2226_v44  ;;  %v2532_v44 = vsel %vm2276_vm7, %v447_v36, -1e+09 }
 0x461   : > { %v749_v41 = vmax.f32 %v747_v33, %v748_v20  ;;  %v441_v20 = vmul.f32 0.125, %v2232_v48  ;;  %v2536_v48 = vsel %vm2262_vm4, %v449_v26, -1e+09 }
 0x463   : > { %1702 = vpush %v749_v41 }
 0x490   : > { %s2490_s17 = spop %1700 }
 0x494   : > { %s1703_s19 = spop %1702 }
 0x495   : > { %v2492_v45 = vstv %s1703_s19  ;;  %s189_s19 = scalar_lea.vmem [#allocation2], %s1650_s11 }
 0x496   : > { %v752_v7 = vsub.f32 %v2478_v17, %v2492_v45  ;;  %v753_v23 = vsub.f32 %v2441_v59, %v2492_v45  ;;  %v754_v28 = vsub.f32 %v2461_v12, %v2492_v45  ;;  %v755_v58 = vsub.f32 %v2424_v29, %v2492_v45 }
 0x497   : > { %v756_v33 = vsub.f32 %v2467_v43, %v2492_v45  ;;  %v757_v53 = vsub.f32 %v2445_v25, %v2492_v45  ;;  %v758_v38 = vsub.f32 %v2449_v19, %v2492_v45  ;;  %v759_v9 = vsub.f32 %v2429_v30, %v2492_v45 }
 0x498   : > { %v760_v55 = vmul.f32 1.442695, %v752_v7  ;;  %v762_v61 = vmul.f32 1.442695, %v753_v23  ;;  %v764_v22 = vmul.f32 1.442695, %v754_v28 }
 0x499   : > { %v766_v4 = vmul.f32 1.442695, %v755_v58  ;;  %v768_v10 = vmul.f32 1.442695, %v756_v33  ;;  %v770_v47 = vmul.f32 1.442695, %v757_v53 }
 0x49a   : > { %1797 = vpow2.f32 %v760_v55  ;;  %v772_v14 = vmul.f32 1.442695, %v758_v38  ;;  %v774_v5 = vmul.f32 1.442695, %v759_v9  ;;  %v443_v7 = vmul.f32 0.125, %v2238_v52 }
 0x49b   : > { %1799 = vpow2.f32 %v762_v61  ;;  %v445_v23 = vmul.f32 0.125, %v2244_v56  ;;  %v2540_v52 = vsel %vm2294_vm11, %v451_v24, -1e+09  ;;  %v2544_v28 = vsel %vm2317_vm12, %v453_v35, -1e+09 }
 0x49c   : > { %1801 = vpow2.f32 %v764_v22  ;;  %v2548_v58 = vsel %vm2252_vm14, %v439_v60, -1e+09  ;;  %v2556_v61 = vsel %vm2257_vm1, %v441_v20, -1e+09  ;;  %v2560_v22 = vsel %vm2267_vm5, %v443_v7, -1e+09 }
 0x49d   : > { %1803 = vpow2.f32 %v766_v4  ;;  %v2564_v4 = vsel %vm2281_vm8, %v445_v23, -1e+09  ;;  %v884_v38 = vsel %vm240_vm0, %v2532_v44, -inf  ;;  %v880_v36 = vsel %vm240_vm0, %v2548_v58, -inf }
 0x49e   : > { %1805 = vpow2.f32 %v768_v10  ;;  %v886_v10 = vsel %vm240_vm0, %v2536_v48, -inf  ;;  %v881_v24 = vsel %vm240_vm0, %v2556_v61, -inf  ;;  %v882_v35 = vsel %vm240_vm0, %v2560_v22, -inf }
 0x49f   : > { %1807 = vpow2.f32 %v770_v47  ;;  %v883_v60 = vsel %vm240_vm0, %v2564_v4, -inf }
 0x4a0   : > { %1809 = vpow2.f32 %v772_v14  ;;  %v888_v14 = vsel %vm240_vm0, %v2540_v52, -inf }
 0x4a1   : > { %1811 = vpow2.f32 %v774_v5  ;;  %v890_v5 = vsel %vm240_vm0, %v2544_v28, -inf  ;;  %v889_v32 = vmax.f32 %v882_v35, %v888_v14 }
 0x4a4   : > { %v2513_v15 = vpop.eup %1797 }
 0x4a5   : > { %v2518_v41 = vpop.eup %1799  ;;  %v776_v6 = vsel %vm240_vm0, %v2513_v15, 0.0 }
 0x4a6   : > { %v2524_v11 = vpop.eup %1801  ;;  %v777_v16 = vsel %vm240_vm0, %v2518_v41, 0.0 }
 0x4a7   : > { %v2528_v21 = vpop.eup %1803  ;;  %v778_v56 = vadd.f32 %v777_v16, %v776_v6  ;;  %v779_v33 = vsel %vm240_vm0, %v2524_v11, 0.0  ;;  %v885_v16 = vmax.f32 %v880_v36, %v884_v38 }
 0x4a8   : > { %v2552_v55 = vpop.eup %1805  ;;  %v781_v9 = vsel %vm240_vm0, %v2528_v21, 0.0 }
 0x4a9   : > { %v780_v53 = vadd.f32 %v779_v33, %v778_v56  ;;  %v1808_v47 = vpop.eup %1807  ;;  %v783_v20 = vsel %vm240_vm0, %v2552_v55, 0.0  ;;  %v891_v33 = vmax.f32 %v883_v60, %v890_v5 }
 0x4aa   : > { %v1810_v7 = vpop.eup %1809  ;;  %v785_v6 = vsel %vm240_vm0, %v1808_v47, 0.0 }
 0x4ab   : > { %v782_v26 = vadd.f32 %v781_v9, %v780_v53  ;;  %v1812_v56 = vpop.eup %1811  ;;  %v887_v9 = vmax.f32 %v881_v24, %v886_v10  ;;  %v787_v51 = vsel %vm240_vm0, %v1810_v7, 0.0  ;;  %v893_v63 = vmax.f32 %v889_v32, %v891_v33 }
 0x4ac   : > { %v789_v2 = vsel %vm240_vm0, %v1812_v56, 0.0 }
 0x4ad   : > { %v784_v23 = vadd.f32 %v783_v20, %v782_v26  ;;  %v892_v1 = vmax.f32 %v885_v16, %v887_v9 }
 0x4af   : > { %v786_v53 = vadd.f32 %v785_v6, %v784_v23  ;;  %v894_v54 = vmax.f32 %v892_v1, %v893_v63 }
 0x4b1   : > { %v788_v40 = vadd.f32 %v787_v51, %v786_v53 }
 0x4b3   : > { %v790_v57 = vadd.f32 %v789_v2, %v788_v40 }
 0x4b5   : > { %791 = vadd.xlane.f32.xlu1 %v790_v57 }
 0x4b9   : > { %895 = vmax.xlane.f32.xlu1 %v894_v54 }
 0x542   : > { %v792_v26 = vpop.xlane.xlu1 %791 }
 0x543   : > { %v793_v20 = vrot.slane %v792_v26, 4 }
 0x545   : > { %v794_v39 = vadd.f32 %v793_v20, %v792_v26 }
 0x547   : > { %v795_v38 = vrot.slane %v794_v39, 2 }
 0x549   : > { %v796_v36 = vadd.f32 %v795_v38, %v794_v39 }
 0x54b   : > { %v797_v5 = vrot.slane %v796_v36, 1 }
 0x54d   : > { %v798_v60 = vadd.f32 %v797_v5, %v796_v36 }
 0x54f   : > { %1704 = vpush %v798_v60 }
 0x580   : > { %s1705_s20 = spop %1704 }
 0x581   : > { %v800_v10 = vstv %s1705_s20  ;;  %s1566_s20 = sshll.u32 %s189_s19, 4  ;;  %s3279_s20 = int_to_ptr.vmem [resolvable:$true] %s1566_s20 }
 0x582   : > { %1813 = vlog2.f32 %v800_v10 }
 0x583   : > { %1815 = vrcp.f32 %v800_v10 }
 0x58c   : > { %v1814_v51 = vpop.eup %1813 }
 0x58d   : > { %v1816_v14 = vpop.eup %1815  ;;  %v812_v2 = vmul.f32 0.6931472, %v1814_v51 }
 0x58e   : > { %v2591_v63 = vmul.f32 %v1816_v14, %v2513_v15  ;;  %v2594_v54 = vmul.f32 %v1816_v14, %v2518_v41  ;;  %v2597_v39 = vmul.f32 %v1816_v14, %v2524_v11  ;;  %v2612_v15 = vmul.f32 %v1816_v14, %v2528_v21 }
 0x58f   : > { %v813_v40 = vadd.f32 %v812_v2, %v2492_v45  ;;  %v2633_v23 = vmul.f32 %v1816_v14, %v1808_v47  ;;  %v2641_v33 = vmul.f32 %v1816_v14, %v1810_v7  ;;  %v2649_v20 = vmul.f32 %v1816_v14, %v1812_v56  ;;  %v896_v56 = vpop.xlane.xlu1 %895 }
 0x591   : > { %v2600_v1 = vsub.f32 %v2478_v17, %v813_v40  ;;  %v2603_v57 = vsub.f32 %v2441_v59, %v813_v40  ;;  %v2606_v32 = vsub.f32 %v2461_v12, %v813_v40  ;;  %v2609_v45 = vsub.f32 %v2424_v29, %v813_v40 }
 0x592   : > { %v2615_v41 = vsub.f32 %v2467_v43, %v813_v40  ;;  %v2624_v12 = vmul.f32 %v1816_v14, %v2552_v55  ;;  %v2627_v29 = vsub.f32 %v2445_v25, %v813_v40  ;;  %v2636_v6 = vsub.f32 %v2449_v19, %v813_v40 }
 0x593   : > { %v822_v11 = vmul.f32 %v2600_v1, %v2591_v63  ;;  %v823_v17 = vmul.f32 %v2603_v57, %v2594_v54  ;;  %v824_v59 = vmul.f32 %v2606_v32, %v2597_v39  ;;  %v825_v21 = vmul.f32 %v2609_v45, %v2612_v15 }
 0x594   : > { %v826_v55 = vmul.f32 %v2615_v41, %v2624_v12  ;;  %v2644_v53 = vsub.f32 %v2429_v30, %v813_v40  ;;  %v827_v9 = vmul.f32 %v2627_v29, %v2633_v23  ;;  %v828_v19 = vmul.f32 %v2636_v6, %v2641_v33 }
 0x595   : > { %v830_v43 = vsel %vm240_vm0, %v822_v11, 0.0  ;;  %v831_v24 = vsel %vm240_vm0, %v823_v17, 0.0  ;;  %v833_v16 = vsel %vm240_vm0, %v824_v59, 0.0  ;;  %v835_v47 = vsel %vm240_vm0, %v825_v21, 0.0 }
 0x596   : > { %v832_v35 = vadd.f32 %v831_v24, %v830_v43  ;;  %v837_v38 = vsel %vm240_vm0, %v826_v55, 0.0  ;;  %v829_v7 = vmul.f32 %v2644_v53, %v2649_v20  ;;  %v839_v30 = vsel %vm240_vm0, %v827_v9, 0.0 }
 0x597   : > { %v841_v60 = vsel %vm240_vm0, %v828_v19, 0.0  ;;  %v897_v14 = vrot.slane %v896_v56, 4 }
 0x598   : > { %v834_v25 = vadd.f32 %v833_v16, %v832_v35  ;;  %v843_v51 = vsel %vm240_vm0, %v829_v7, 0.0 }
 0x599   : > { %v898_v40 = vmax.f32 %v896_v56, %v897_v14 }
 0x59a   : > { %v836_v26 = vadd.f32 %v835_v47, %v834_v25  ;;  %v701_v47 = vstv %s2490_s17  ;;  %s1667_s17 = sshll.u32 %s2005_s16, 7  ;;  %s1963_s16 = smov [#allocation2]  }
 0x59b   : > { %v899_v11 = vrot.slane %v898_v40, 2 }
 0x59c   : > { %v838_v36 = vadd.f32 %v837_v38, %v836_v26 }
 0x59d   : > { %v900_v43 = vmax.f32 %v898_v40, %v899_v11 }
 0x59e   : > { %v840_v5 = vadd.f32 %v839_v30, %v838_v36 }
 0x59f   : > { %v901_v55 = vrot.slane %v900_v43, 1 }
 0x5a0   : > { %v842_v10 = vadd.f32 %v841_v60, %v840_v5 }
 0x5a1   : > { %v902_v9 = vmax.f32 %v900_v43, %v901_v55  ;;  %v450_v55 = vmul.f32 0.125, %v2188_v13 }
 0x5a2   : > { %v844_v2 = vadd.f32 %v843_v51, %v842_v10 }
 0x5a4   : > { %845 = vadd.xlane.f32.xlu0 %v844_v2 }
 0x631   : > { %v846_v17 = vpop.xlane.xlu0 %845 }
 0x632   : > { %v847_v59 = vrot.slane %v846_v17, 4 }
 0x634   : > { %v848_v21 = vadd.f32 %v847_v59, %v846_v17 }
 0x636   : > { %v849_v24 = vrot.slane %v848_v21, 2 }
 0x638   : > { %v850_v35 = vadd.f32 %v849_v24, %v848_v21  ;;  %v446_v24 = vmul.f32 0.125, %v2174_v3 }
 0x63a   : > { %v851_v16 = vrot.slane %v850_v35, 1 }
 0x63c   : > { %v852_v25 = vadd.f32 %v851_v16, %v850_v35  ;;  %v448_v35 = vmul.f32 0.125, %v2180_v8 }
 0x63e   : > { %1706 = vpush %v852_v25  ;;  %v452_v25 = vmul.f32 0.125, %v2194_v18 }
 0x63f   : > { %1708 = vpush %v902_v9  ;;  %v438_v9 = vmul.f32 0.125, %v2222_v42  ;;  %v2702_v42 = vsel %vm2276_vm7, %v446_v24, -1e+09 }
 0x66f   : > { %s1707_s24 = spop %1706 }
 0x670   : > { %v854_v26 = vstv %s1707_s24  ;;  %s1709_s25 = spop %1708 }
 0x671   : > { %v2660_v19 = vadd.f32 %v854_v26, %v701_v47  ;;  %v2662_v38 = vstv %s1709_s25  ;;  %v440_v47 = vmul.f32 0.125, %v2228_v46  ;;  %v2706_v46 = vsel %vm2262_vm4, %v448_v35, -1e+09 }
 0x672   : > { %v905_v36 = vsub.f32 %v2548_v58, %v2662_v38  ;;  %v906_v7 = vsub.f32 %v2556_v61, %v2662_v38  ;;  %v907_v30 = vsub.f32 %v2560_v22, %v2662_v38  ;;  %v908_v5 = vsub.f32 %v2564_v4, %v2662_v38 }
 0x673   : > { %v909_v60 = vsub.f32 %v2532_v44, %v2662_v38  ;;  %v910_v14 = vsub.f32 %v2536_v48, %v2662_v38  ;;  %v911_v40 = vsub.f32 %v2540_v52, %v2662_v38  ;;  %v912_v17 = vsub.f32 %v2544_v28, %v2662_v38 }
 0x674   : > { %v913_v10 = vmul.f32 1.442695, %v905_v36  ;;  %v915_v51 = vmul.f32 1.442695, %v906_v7  ;;  %v917_v2 = vmul.f32 1.442695, %v907_v30 }
 0x675   : > { %v919_v56 = vmul.f32 1.442695, %v908_v5  ;;  %v921_v11 = vmul.f32 1.442695, %v909_v60  ;;  %v923_v59 = vmul.f32 1.442695, %v910_v14 }
 0x676   : > { %1817 = vpow2.f32 %v913_v10  ;;  %v925_v21 = vmul.f32 1.442695, %v911_v40  ;;  %v927_v43 = vmul.f32 1.442695, %v912_v17  ;;  %v442_v36 = vmul.f32 0.125, %v2234_v50  ;;  %v3429_v7 = vld [vmem:[#allocation12_spill] sm:$0xff] }
 0x677   : > { %1819 = vpow2.f32 %v915_v51  ;;  %v444_v30 = vmul.f32 0.125, %v3429_v7  ;;  %3430 = vst [vmem:[#allocation12_spill] sm:$0xff] %v2706_v46  ;;  %v2710_v50 = vsel %vm2294_vm11, %v450_v55, -1e+09  ;;  %v2714_v60 = vsel %vm2317_vm12, %v452_v25, -1e+09 }
 0x678   : > { %1821 = vpow2.f32 %v917_v2  ;;  %3431 = vst [vmem:[#allocation38_spill] sm:$0xff] %v2710_v50  ;;  %3432 = vst [vmem:[#allocation39_spill] sm:$0xff] %v2714_v60  ;;  %v2718_v10 = vsel %vm2252_vm14, %v438_v9, -1e+09  ;;  %v2728_v14 = vsel %vm2267_vm5, %v442_v36, -1e+09 }
 0x679   : > { %1823 = vpow2.f32 %v919_v56  ;;  %v2724_v56 = vsel %vm2257_vm1, %v440_v47, -1e+09  ;;  %v1041_v35 = vsel %vm240_vm0, %v2710_v50, -inf  ;;  %v1043_v55 = vsel %vm240_vm0, %v2714_v60, -inf }
 0x67a   : > { %1825 = vpow2.f32 %v921_v11  ;;  %v2732_v11 = vsel %vm2281_vm8, %v444_v30, -1e+09  ;;  %v1033_v25 = vsel %vm240_vm0, %v2718_v10, -inf  ;;  %v1034_v47 = vsel %vm240_vm0, %v2724_v56, -inf }
 0x67b   : > { %1827 = vpow2.f32 %v923_v59  ;;  %v1037_v59 = vsel %vm240_vm0, %v2702_v42, -inf  ;;  %v1035_v36 = vsel %vm240_vm0, %v2728_v14, -inf  ;;  %v1036_v7 = vsel %vm240_vm0, %v2732_v11, -inf }
 0x67c   : > { %1829 = vpow2.f32 %v925_v21  ;;  %v1039_v21 = vsel %vm240_vm0, %v2706_v46, -inf }
 0x67d   : > { %1831 = vpow2.f32 %v927_v43  ;;  %v1040_v31 = vmax.f32 %v1034_v47, %v1039_v21  ;;  %v3439_v47 = vld [vmem:[#allocation33_spill] sm:$0xff] }
 0x680   : > { %v2683_v16 = vpop.eup %1817 }
 0x681   : > { %v2688_v26 = vpop.eup %1819  ;;  %v929_v3 = vsel %vm240_vm0, %v2683_v16, 0.0 }
 0x682   : > { %v2694_v8 = vpop.eup %1821  ;;  %v930_v13 = vsel %vm240_vm0, %v2688_v26, 0.0 }
 0x683   : > { %v2698_v18 = vpop.eup %1823  ;;  %v931_v5 = vadd.f32 %v930_v13, %v929_v3  ;;  %v932_v51 = vsel %vm240_vm0, %v2694_v8, 0.0 }
 0x684   : > { %v1826_v2 = vpop.eup %1825  ;;  %v934_v43 = vsel %vm240_vm0, %v2698_v18, 0.0 }
 0x685   : > { %v933_v17 = vadd.f32 %v932_v51, %v931_v5  ;;  %v1828_v24 = vpop.eup %1827  ;;  %v936_v30 = vsel %vm240_vm0, %v1826_v2, 0.0  ;;  %v1038_v51 = vmax.f32 %v1033_v25, %v1037_v59 }
 0x686   : > { %v1830_v3 = vpop.eup %1829  ;;  %v938_v5 = vsel %vm240_vm0, %v1828_v24, 0.0 }
 0x687   : > { %v935_v9 = vadd.f32 %v934_v43, %v933_v17  ;;  %v1832_v62 = vpop.eup %1831  ;;  %v1042_v17 = vmax.f32 %v1035_v36, %v1041_v35  ;;  %v1044_v43 = vmax.f32 %v1036_v7, %v1043_v55  ;;  %v940_v37 = vsel %vm240_vm0, %v1830_v3, 0.0  ;;  %v3440_v7 = vld [vmem:[#allocation35_spill] sm:$0xff] }
 0x688   : > { %v942_v34 = vsel %vm240_vm0, %v1832_v62, 0.0  ;;  %v1045_v27 = vmax.f32 %v1038_v51, %v1040_v31  ;;  %v3435_v31 = vld [vmem:[#allocation23_spill] sm:$0xff]  ;;  %v861_v36 = vadd.f32 %v2633_v23, %v3439_v47  ;;  %v3448_v47 = vld [vmem:[#allocation34_spill] sm:$0xff] }
 0x689   : > { %v937_v13 = vadd.f32 %v936_v30, %v935_v9  ;;  %v1046_v60 = vmax.f32 %v1042_v17, %v1044_v43 }
 0x68b   : > { %v939_v49 = vadd.f32 %v938_v5, %v937_v13  ;;  %v1047_v50 = vmax.f32 %v1045_v27, %v1046_v60  ;;  %v3436_v27 = vld [vmem:[#allocation24_spill] sm:$0xff]  ;;  %v862_v5 = vadd.f32 %v2641_v33, %v3440_v7 }
 0x68c   : > { %v3449_v7 = vld [vmem:[#allocation36_spill] sm:$0xff] }
 0x68d   : > { %v941_v40 = vadd.f32 %v940_v37, %v939_v49  ;;  %v3434_v37 = vld [vmem:[#allocation22_spill] sm:$0xff]  ;;  %v858_v49 = vadd.f32 %v2597_v39, %v3436_v27 }
 0x68f   : > { %v943_v0 = vadd.f32 %v942_v34, %v941_v40  ;;  %v856_v34 = vadd.f32 %v2591_v63, %v3434_v37  ;;  %v3438_v40 = vld [vmem:[#allocation31_spill] sm:$0xff]  ;;  %v3441_v63 = vld [vmem:[#allocation37_spill] sm:$0xff]  ;;  %v3443_v37 = vld [vmem:[#allocation26_spill] sm:$0xff] }
 0x690   : > { %v860_v55 = vadd.f32 %v2624_v12, %v3438_v40  ;;  %v863_v51 = vadd.f32 %v2649_v20, %v3441_v63 }
 0x691   : > { %944 = vadd.xlane.f32.xlu0 %v943_v0  ;;  %v857_v0 = vadd.f32 %v2594_v54, %v3435_v31  ;;  %v3444_v31 = vld [vmem:[#allocation27_spill] sm:$0xff] }
 0x695   : > { %1048 = vmax.xlane.f32.xlu0 %v1047_v50  ;;  %v3437_v50 = vld [vmem:[#allocation29_spill] sm:$0xff] }
 0x696   : > { %v859_v60 = vadd.f32 %v2612_v15, %v3437_v50 }
 0x71e   : > { %v945_v9 = vpop.xlane.xlu0 %944 }
 0x71f   : > { %v946_v30 = vrot.slane %v945_v9, 4 }
 0x721   : > { %v947_v46 = vadd.f32 %v946_v30, %v945_v9 }
 0x723   : > { %v948_v59 = vrot.slane %v947_v46, 2 }
 0x725   : > { %v949_v25 = vadd.f32 %v948_v59, %v947_v46 }
 0x727   : > { %v950_v13 = vrot.slane %v949_v25, 1 }
 0x729   : > { %v951_v21 = vadd.f32 %v950_v13, %v949_v25 }
 0x72b   : > { %1710 = vpush %v951_v21 }
 0x75c   : > { %s1711_s26 = spop %1710 }
 0x75d   : > { %v953_v35 = vstv %s1711_s26 }
 0x75e   : > { %1833 = vrcp.f32 %v953_v35 }
 0x75f   : > { %1835 = vlog2.f32 %v953_v35  ;;  %v3442_v35 = vld [vmem:[#allocation25_spill] sm:$0xff] }
 0x768   : > { %v1834_v46 = vpop.eup %1833 }
 0x769   : > { %v1836_v54 = vpop.eup %1835  ;;  %v956_v17 = vmul.f32 %v1834_v46, %v2683_v16  ;;  %v957_v39 = vmul.f32 %v1834_v46, %v2688_v26  ;;  %v958_v15 = vmul.f32 %v1834_v46, %v2694_v8  ;;  %v959_v43 = vmul.f32 %v1834_v46, %v2698_v18 }
 0x76a   : > { %v965_v9 = vmul.f32 0.6931472, %v1836_v54  ;;  %v960_v12 = vmul.f32 %v1834_v46, %v1826_v2  ;;  %v961_v30 = vmul.f32 %v1834_v46, %v1828_v24  ;;  %v962_v59 = vmul.f32 %v1834_v46, %v1830_v3 }
 0x76b   : > { %v963_v23 = vmul.f32 %v1834_v46, %v1832_v62  ;;  %v2776_v25 = vadd.f32 %v956_v17, %v856_v34  ;;  %v2778_v33 = vadd.f32 %v957_v39, %v857_v0  ;;  %v2780_v13 = vadd.f32 %v958_v15, %v858_v49  ;;  %v3445_v49 = vld [vmem:[#allocation28_spill] sm:$0xff] }
 0x76c   : > { %v966_v20 = vadd.f32 %v965_v9, %v2662_v38  ;;  %v2783_v16 = vadd.f32 %v959_v43, %v859_v60  ;;  %v2785_v26 = vadd.f32 %v960_v12, %v860_v55  ;;  %v2787_v8 = vadd.f32 %v961_v30, %v861_v36  ;;  %v3447_v46 = vld [vmem:[#allocation32_spill] sm:$0xff] }
 0x76d   : > { %v2789_v18 = vadd.f32 %v962_v59, %v862_v5  ;;  %v2791_v2 = vadd.f32 %v963_v23, %v863_v51  ;;  %v864_v38 = vadd.f32 %v2600_v1, %v3442_v35  ;;  %v865_v34 = vadd.f32 %v2603_v57, %v3443_v37 }
 0x76e   : > { %v967_v62 = vsub.f32 %v2548_v58, %v966_v20  ;;  %v968_v24 = vsub.f32 %v2556_v61, %v966_v20  ;;  %v969_v3 = vsub.f32 %v2560_v22, %v966_v20  ;;  %v970_v21 = vsub.f32 %v2564_v4, %v966_v20  ;;  %v3446_v22 = vld [vmem:[#allocation30_spill] sm:$0xff] }
 0x76f   : > { %v866_v0 = vadd.f32 %v2606_v32, %v3444_v31  ;;  %v971_v27 = vsub.f32 %v2532_v44, %v966_v20  ;;  %v867_v58 = vadd.f32 %v2609_v45, %v3445_v49  ;;  %v868_v4 = vadd.f32 %v2615_v41, %v3446_v22 }
 0x770   : > { %v975_v50 = vmul.f32 %v967_v62, %v956_v17  ;;  %v976_v61 = vmul.f32 %v968_v24, %v957_v39  ;;  %v977_v60 = vmul.f32 %v969_v3, %v958_v15  ;;  %v869_v1 = vadd.f32 %v2627_v29, %v3447_v46 }
 0x771   : > { %v972_v40 = vsub.f32 %v2536_v48, %v966_v20  ;;  %v973_v57 = vsub.f32 %v2540_v52, %v966_v20  ;;  %v974_v32 = vsub.f32 %v2544_v28, %v966_v20  ;;  %v978_v55 = vmul.f32 %v970_v21, %v959_v43 }
 0x772   : > { %v983_v44 = vsel %vm240_vm0, %v975_v50, 0.0  ;;  %v984_v45 = vsel %vm240_vm0, %v976_v61, 0.0  ;;  %v870_v36 = vadd.f32 %v2636_v6, %v3448_v47  ;;  %v871_v41 = vadd.f32 %v2644_v53, %v3449_v7 }
 0x773   : > { %v979_v5 = vmul.f32 %v971_v27, %v960_v12  ;;  %v985_v63 = vadd.f32 %v984_v45, %v983_v44  ;;  %v986_v29 = vsel %vm240_vm0, %v977_v60, 0.0  ;;  %v2820_v48 = vadd.f32 %v967_v62, %v864_v38 }
 0x774   : > { %v2822_v52 = vadd.f32 %v968_v24, %v865_v34  ;;  %v2824_v28 = vadd.f32 %v969_v3, %v866_v0  ;;  %v2826_v54 = vadd.f32 %v970_v21, %v867_v58  ;;  %v2828_v17 = vadd.f32 %v971_v27, %v868_v4  ;;  %v1049_v34 = vpop.xlane.xlu0 %1048 }
 0x775   : > { %v987_v51 = vadd.f32 %v986_v29, %v985_v63  ;;  %v2830_v39 = vadd.f32 %v972_v40, %v869_v1  ;;  %v980_v6 = vmul.f32 %v972_v40, %v961_v30  ;;  %v988_v53 = vsel %vm240_vm0, %v978_v55, 0.0  ;;  %v3451_v29 = vld [vmem:[#allocation38_spill] sm:$0xff] }
 0x776   : > { %v2833_v15 = vadd.f32 %v973_v57, %v870_v36  ;;  %v2835_v43 = vadd.f32 %v974_v32, %v871_v41  ;;  %v981_v12 = vmul.f32 %v973_v57, %v962_v59  ;;  %v990_v20 = vsel %vm240_vm0, %v979_v5, 0.0  ;;  %v3450_v5 = vld [vmem:[#allocation12_spill] sm:$0xff] }
 0x777   : > { %v989_v9 = vadd.f32 %v988_v53, %v987_v51  ;;  %v982_v24 = vmul.f32 %v974_v32, %v963_v23  ;;  %v992_v3 = vsel %vm240_vm0, %v980_v6, 0.0  ;;  %v1050_v31 = vrot.slane %v1049_v34, 4  ;;  %v3452_v53 = vld [vmem:[#allocation39_spill] sm:$0xff] }
 0x778   : > { %v994_v35 = vsel %vm240_vm0, %v981_v12, 0.0 }
 0x779   : > { %v991_v62 = vadd.f32 %v990_v20, %v989_v9  ;;  %v996_v30 = vsel %vm240_vm0, %v982_v24, 0.0  ;;  %v1051_v0 = vmax.f32 %v1049_v34, %v1050_v31  ;;  %v3453_v24 = vld [vmem:[#allocation5_spill] sm:$0xff]  ;;  %v3457_v34 = vld [vmem:[#allocation8_spill] sm:$0xff] }
 0x77a   : > { %v457_v31 = vmul.f32 0.125, %v3457_v34 }
 0x77b   : > { %v993_v21 = vadd.f32 %v992_v3, %v991_v62  ;;  %v1052_v27 = vrot.slane %v1051_v0, 2  ;;  %v454_v3 = vmul.f32 0.125, %v3453_v24 }
 0x77d   : > { %v995_v38 = vadd.f32 %v994_v35, %v993_v21  ;;  %v1053_v50 = vmax.f32 %v1051_v0, %v1052_v27  ;;  %v3454_v21 = vld [vmem:[#allocation6_spill] sm:$0xff]  ;;  %v3458_v0 = vld [vmem:[#allocation9_spill] sm:$0xff] }
 0x77e   : > { %v2864_v35 = vmul.f32 0.125, %v3454_v21  ;;  %v2871_v27 = vmul.f32 0.125, %v3458_v0 }
 0x77f   : > { %v997_v37 = vadd.f32 %v996_v30, %v995_v38  ;;  %v1054_v60 = vrot.slane %v1053_v50, 1  ;;  %v3456_v38 = vld [vmem:[#allocation7_spill] sm:$0xff] }
 0x780   : > { %3455 = vst [vmem:[#allocation22_spill] sm:$0xff] %v2864_v35  ;;  %v456_v30 = vmul.f32 0.125, %v3456_v38  ;;  %3459 = vst [vmem:[#allocation23_spill] sm:$0xff] %v2871_v27 }
 0x781   : > { %998 = vadd.xlane.f32.xlu1 %v997_v37  ;;  %v1055_v46 = vmax.f32 %v1053_v50, %v1054_v60  ;;  %v3461_v50 = vld [vmem:[#allocation11_spill] sm:$0xff] }
 0x80e   : > { %v999_v49 = vpop.xlane.xlu1 %998 }
 0x80f   : > { %v1000_v59 = vrot.slane %v999_v49, 4 }
 0x811   : > { %v1001_v58 = vadd.f32 %v1000_v59, %v999_v49  ;;  %v3460_v49 = vld [vmem:[#allocation10_spill] sm:$0xff] }
 0x812   : > { %v459_v59 = vmul.f32 0.125, %v3460_v49 }
 0x813   : > { %v1002_v61 = vrot.slane %v1001_v58, 2 }
 0x815   : > { %v1003_v23 = vadd.f32 %v1002_v61, %v1001_v58  ;;  %v2877_v61 = vmul.f32 0.125, %v3461_v50 }
 0x817   : > { %v1004_v22 = vrot.slane %v1003_v23, 1  ;;  %3462 = vst [vmem:[#allocation24_spill] sm:$0xff] %v2877_v61  ;;  %v2919_v24 = vsel %vm2294_vm11, %v2877_v61, -1e+09 }
 0x818   : > { %3476 = vst [vmem:[#allocation25_spill] sm:$0xff] %v2919_v24 }
 0x819   : > { %v1005_v4 = vadd.f32 %v1004_v22, %v1003_v23  ;;  %v3463_v23 = vld [vmem:[#allocation13_spill] sm:$0xff] }
 0x81a   : > { %v461_v60 = vmul.f32 0.125, %v3463_v23 }
 0x81b   : > { %1712 = vpush %v1005_v4 }
 0x81c   : > { %1714 = vpush %v1055_v46  ;;  %v2923_v38 = vsel %vm2317_vm12, %v461_v60, -1e+09 }
 0x81d   : > { %3478 = vst [vmem:[#allocation26_spill] sm:$0xff] %v2923_v38 }
 0x84c   : > { %s1713_s27 = spop %1712 }
 0x84d   : > { %v1007_v1 = vstv %s1713_s27  ;;  %s1715_s28 = spop %1714  ;;  %s3277_s27 = scalar_lea.hbm %s3322_s3, %s1667_s17 }
 0x84e   : > { %v2842_v40 = vadd.f32 %v1007_v1, %v2660_v19  ;;  %v2844_v57 = vstv %s1715_s28  ;;  %s1553_s28 = scalar_lea.sflag [#allocation3], %s187_s9 }
 0x84f   : > { %v1058_v32 = vsub.f32 %v2718_v10, %v2844_v57  ;;  %v1059_v55 = vsub.f32 %v2724_v56, %v2844_v57  ;;  %v1060_v44 = vsub.f32 %v2728_v14, %v2844_v57  ;;  %v1061_v45 = vsub.f32 %v2732_v11, %v2844_v57 }
 0x850   : > { %v1062_v47 = vsub.f32 %v2702_v42, %v2844_v57  ;;  %v1063_v63 = vsub.f32 %v3450_v5, %v2844_v57  ;;  %v1064_v51 = vsub.f32 %v3451_v29, %v2844_v57  ;;  %v1065_v9 = vsub.f32 %v3452_v53, %v2844_v57 }
 0x851   : > { %v1066_v36 = vmul.f32 1.442695, %v1058_v32  ;;  %v1068_v19 = vmul.f32 1.442695, %v1059_v55  ;;  %v1070_v7 = vmul.f32 1.442695, %v1060_v44 }
 0x852   : > { %v1072_v41 = vmul.f32 1.442695, %v1061_v45  ;;  %v1074_v6 = vmul.f32 1.442695, %v1062_v47  ;;  %v1076_v12 = vmul.f32 1.442695, %v1063_v63 }
 0x853   : > { %1837 = vpow2.f32 %v1066_v36  ;;  %v1078_v20 = vmul.f32 1.442695, %v1064_v51  ;;  %v1080_v62 = vmul.f32 1.442695, %v1065_v9  ;;  %v2890_v55 = vsel %vm2252_vm14, %v454_v3, -1e+09 }
 0x854   : > { %1839 = vpow2.f32 %v1068_v19  ;;  %v2895_v45 = vsel %vm2257_vm1, %v2864_v35, -1e+09  ;;  %v2899_v36 = vsel %vm2267_vm5, %v456_v30, -1e+09  ;;  %v2908_v51 = vsel %vm2276_vm7, %v2871_v27, -1e+09 }
 0x855   : > { %1841 = vpow2.f32 %v1070_v7  ;;  %3466 = vst [vmem:[#allocation29_spill] sm:$0xff] %v2895_v45  ;;  %3468 = vst [vmem:[#allocation31_spill] sm:$0xff] %v2899_v36  ;;  %v1186_v0 = vsel %vm240_vm0, %v2890_v55, -inf  ;;  %v1187_v49 = vsel %vm240_vm0, %v2895_v45, -inf  ;;  %v1196_v7 = vsel %vm240_vm0, %v2923_v38, -inf }
 0x856   : > { %1843 = vpow2.f32 %v1072_v41  ;;  %v2903_v41 = vsel %vm2281_vm8, %v457_v31, -1e+09  ;;  %3472 = vst [vmem:[#allocation35_spill] sm:$0xff] %v2908_v51 }
 0x857   : > { %1845 = vpow2.f32 %v1074_v6  ;;  %3470 = vst [vmem:[#allocation33_spill] sm:$0xff] %v2903_v41 }
 0x858   : > { %1847 = vpow2.f32 %v1076_v12  ;;  %v1194_v12 = vsel %vm240_vm0, %v2919_v24, -inf }
 0x859   : > { %1849 = vpow2.f32 %v1078_v20  ;;  %v2914_v20 = vsel %vm2262_vm4, %v459_v59, -1e+09 }
 0x85a   : > { %1851 = vpow2.f32 %v1080_v62  ;;  %3474 = vst [vmem:[#allocation37_spill] sm:$0xff] %v2914_v20  ;;  %v1190_v62 = vsel %vm240_vm0, %v2908_v51, -inf }
 0x85b   : > { %v1191_v32 = vmax.f32 %v1186_v0, %v1190_v62 }
 0x85d   : > { %v2867_v37 = vpop.eup %1837 }
 0x85e   : > { %v2874_v58 = vpop.eup %1839  ;;  %v1082_v22 = vsel %vm240_vm0, %v2867_v37, 0.0 }
 0x85f   : > { %v2882_v4 = vpop.eup %1841  ;;  %v1083_v46 = vsel %vm240_vm0, %v2874_v58, 0.0 }
 0x860   : > { %v2886_v1 = vpop.eup %1843  ;;  %v1084_v19 = vadd.f32 %v1083_v46, %v1082_v22  ;;  %v1085_v6 = vsel %vm240_vm0, %v2882_v4, 0.0  ;;  %v1188_v22 = vsel %vm240_vm0, %v2899_v36, -inf  ;;  %v1189_v46 = vsel %vm240_vm0, %v2903_v41, -inf }
 0x861   : > { %v1846_v9 = vpop.eup %1845  ;;  %v1087_v50 = vsel %vm240_vm0, %v2886_v1, 0.0 }
 0x862   : > { %v1086_v34 = vadd.f32 %v1085_v6, %v1084_v19  ;;  %v1848_v23 = vpop.eup %1847  ;;  %v1192_v6 = vsel %vm240_vm0, %v2914_v20, -inf  ;;  %v1089_v47 = vsel %vm240_vm0, %v1846_v9, 0.0 }
 0x863   : > { %v1850_v63 = vpop.eup %1849  ;;  %v1091_v21 = vsel %vm240_vm0, %v1848_v23, 0.0  ;;  %v1193_v35 = vmax.f32 %v1187_v49, %v1192_v6 }
 0x864   : > { %v1088_v19 = vadd.f32 %v1087_v50, %v1086_v34  ;;  %v1852_v61 = vpop.eup %1851  ;;  %v1195_v34 = vmax.f32 %v1188_v22, %v1194_v12  ;;  %v1197_v50 = vmax.f32 %v1189_v46, %v1196_v7  ;;  %v1093_v20 = vsel %vm240_vm0, %v1850_v63, 0.0 }
 0x865   : > { %v1095_v24 = vsel %vm240_vm0, %v1852_v61, 0.0  ;;  %v1198_v36 = vmax.f32 %v1191_v32, %v1193_v35 }
 0x866   : > { %v1090_v44 = vadd.f32 %v1089_v47, %v1088_v19  ;;  %v1199_v38 = vmax.f32 %v1195_v34, %v1197_v50 }
 0x868   : > { %v1092_v27 = vadd.f32 %v1091_v21, %v1090_v44  ;;  %v1200_v45 = vmax.f32 %v1198_v36, %v1199_v38 }
 0x86a   : > { %v1094_v51 = vadd.f32 %v1093_v20, %v1092_v27 }
 0x86c   : > { %v1096_v41 = vadd.f32 %v1095_v24, %v1094_v51 }
 0x86e   : > { %1097 = vadd.xlane.f32.xlu1 %v1096_v41 }
 0x872   : > { %1201 = vmax.xlane.f32.xlu1 %v1200_v45 }
 0x883   : > { %1339 = vrot.lane.b32.xlu1 %v454_v3, %s1962_s6 }
 0x887   : > { %1343 = vrot.lane.b32.xlu1 %v456_v30, %s1962_s6 }
 0x88b   : > { %1345 = vrot.lane.b32.xlu1 %v457_v31, %s1962_s6 }
 0x88f   : > { %1349 = vrot.lane.b32.xlu1 %v459_v59, %s1962_s6 }
 0x893   : > { %1353 = vrot.lane.b32.xlu1 %v461_v60, %s1962_s6 }
 0x8fb   : > { %v1098_v44 = vpop.xlane.xlu1 %1097 }
 0x8fc   : > { %v1099_v27 = vrot.slane %v1098_v44, 4 }
 0x8fe   : > { %v1100_v47 = vadd.f32 %v1099_v27, %v1098_v44 }
 0x900   : > { %v1101_v7 = vrot.slane %v1100_v47, 2 }
 0x902   : > { %v1102_v51 = vadd.f32 %v1101_v7, %v1100_v47 }
 0x904   : > { %v1103_v35 = vrot.slane %v1102_v51, 1 }
 0x906   : > { %v1104_v32 = vadd.f32 %v1103_v35, %v1102_v51 }
 0x908   : > { %1716 = vpush %v1104_v32 }
 0x939   : > { %s1717_s29 = spop %1716 }
 0x93a   : > { %v1106_v45 = vstv %s1717_s29  ;;  %s1897_s29 = scalar_lea.vmem %s3279_s20, 128 }
 0x93b   : > { %1853 = vrcp.f32 %v1106_v45  ;;  %p1898_p11 = scmp.ne.s32.totalorder %s3279_s20, %s1897_s29 }
 0x93c   : > { %1855 = vlog2.f32 %v1106_v45 }
 0x93d   : > { %p1899_p12 = pnand %p1898_p11, %p2022_p5 }
 0x93f   : > { %p1900_p13 = pneg %p1899_p12 }
 0x945   : > { %v1854_v3 = vpop.eup %1853 }
 0x946   : > { %v1856_v30 = vpop.eup %1855  ;;  %v1109_v31 = vmul.f32 %v1854_v3, %v2867_v37  ;;  %v1110_v59 = vmul.f32 %v1854_v3, %v2874_v58  ;;  %v1111_v60 = vmul.f32 %v1854_v3, %v2882_v4  ;;  %v1112_v36 = vmul.f32 %v1854_v3, %v2886_v1 }
 0x947   : > { %v1118_v41 = vmul.f32 0.6931472, %v1856_v30  ;;  %v1113_v12 = vmul.f32 %v1854_v3, %v1846_v9  ;;  %v1114_v20 = vmul.f32 %v1854_v3, %v1848_v23  ;;  %v1115_v62 = vmul.f32 %v1854_v3, %v1850_v63 }
 0x948   : > { %v1116_v24 = vmul.f32 %v1854_v3, %v1852_v61  ;;  %v2957_v21 = vadd.f32 %v1109_v31, %v2776_v25  ;;  %v2960_v38 = vadd.f32 %v1110_v59, %v2778_v33  ;;  %v2963_v0 = vadd.f32 %v1111_v60, %v2780_v13 }
 0x949   : > { %v1119_v37 = vadd.f32 %v1118_v41, %v2844_v57  ;;  %v2967_v58 = vadd.f32 %v1112_v36, %v2783_v16  ;;  %v2970_v4 = vadd.f32 %v1113_v12, %v2785_v26  ;;  %v2973_v1 = vadd.f32 %v1114_v20, %v2787_v8 }
 0x94a   : > { %v2976_v25 = vadd.f32 %v1115_v62, %v2789_v18  ;;  %v2979_v33 = vadd.f32 %v1116_v24, %v2791_v2 }
 0x94b   : > { %v1120_v13 = vsub.f32 %v2718_v10, %v1119_v37  ;;  %v1121_v61 = vsub.f32 %v2724_v56, %v1119_v37  ;;  %v1122_v57 = vsub.f32 %v2728_v14, %v1119_v37  ;;  %v1123_v16 = vsub.f32 %v2732_v11, %v1119_v37 }
 0x94c   : > { %v1124_v26 = vsub.f32 %v2702_v42, %v1119_v37  ;;  %v1125_v49 = vsub.f32 %v3450_v5, %v1119_v37  ;;  %v1126_v18 = vsub.f32 %v3451_v29, %v1119_v37  ;;  %v1127_v2 = vsub.f32 %v3452_v53, %v1119_v37 }
 0x94d   : > { %v1128_v63 = vmul.f32 %v1120_v13, %v1109_v31  ;;  %v1129_v9 = vmul.f32 %v1121_v61, %v1110_v59  ;;  %v1130_v8 = vmul.f32 %v1122_v57, %v1111_v60  ;;  %v1131_v23 = vmul.f32 %v1123_v16, %v1112_v36 }
 0x94e   : > { %v1132_v22 = vmul.f32 %v1124_v26, %v1113_v12  ;;  %v2993_v42 = vadd.f32 %v1120_v13, %v2820_v48  ;;  %v2996_v46 = vadd.f32 %v1121_v61, %v2822_v52  ;;  %v2999_v5 = vadd.f32 %v1122_v57, %v2824_v28 }
 0x94f   : > { %v1136_v10 = vsel %vm240_vm0, %v1128_v63, 0.0  ;;  %v1137_v56 = vsel %vm240_vm0, %v1129_v9, 0.0  ;;  %v1139_v11 = vsel %vm240_vm0, %v1130_v8, 0.0  ;;  %v3002_v53 = vadd.f32 %v1123_v16, %v2826_v54  ;;  %v3479_v16 = vld [vmem:[#allocation29_spill] sm:$0xff]  ;;  %v3480_v63 = vld [vmem:[#allocation31_spill] sm:$0xff] }
 0x950   : > { %v1138_v14 = vadd.f32 %v1137_v56, %v1136_v10  ;;  %v3005_v19 = vadd.f32 %v1124_v26, %v2828_v17  ;;  %v3008_v6 = vadd.f32 %v1125_v49, %v2830_v39  ;;  %v1133_v34 = vmul.f32 %v1125_v49, %v1114_v20  ;;  %v3481_v8 = vld [vmem:[#allocation33_spill] sm:$0xff] }
 0x951   : > { %v1141_v48 = vsel %vm240_vm0, %v1131_v23, 0.0  ;;  %v3012_v50 = vadd.f32 %v1126_v18, %v2833_v15  ;;  %v3015_v52 = vadd.f32 %v1127_v2, %v2835_v43  ;;  %v1134_v44 = vmul.f32 %v1126_v18, %v1115_v62  ;;  %v1202_v15 = vpop.xlane.xlu1 %1201  ;;  %v3482_v18 = vld [vmem:[#allocation35_spill] sm:$0xff] }
 0x952   : > { %v1140_v29 = vadd.f32 %v1139_v11, %v1138_v14  ;;  %v1143_v54 = vsel %vm240_vm0, %v1132_v22, 0.0  ;;  %v1135_v47 = vmul.f32 %v1127_v2, %v1116_v24  ;;  %v1145_v17 = vsel %vm240_vm0, %v1133_v34, 0.0  ;;  %v3483_v22 = vld [vmem:[#allocation37_spill] sm:$0xff] }
 0x953   : > { %v1147_v39 = vsel %vm240_vm0, %v1134_v44, 0.0  ;;  %v1203_v45 = vrot.slane %v1202_v15, 4  ;;  %v3484_v11 = vld [vmem:[#allocation25_spill] sm:$0xff] }
 0x954   : > { %v1142_v28 = vadd.f32 %v1141_v48, %v1140_v29  ;;  %v1149_v35 = vsel %vm240_vm0, %v1135_v47, 0.0  ;;  %v3485_v48 = vld [vmem:[#allocation26_spill] sm:$0xff] }
 0x955   : > { %v1204_v43 = vmax.f32 %v1202_v15, %v1203_v45 }
 0x956   : > { %v1144_v27 = vadd.f32 %v1143_v54, %v1142_v28 }
 0x957   : > { %v1205_v3 = vrot.slane %v1204_v43, 2 }
 0x958   : > { %v1146_v7 = vadd.f32 %v1145_v17, %v1144_v27 }
 0x959   : > { %v1206_v60 = vmax.f32 %v1204_v43, %v1205_v3 }
 0x95a   : > { %v1148_v51 = vadd.f32 %v1147_v39, %v1146_v7 }
 0x95b   : > { %v1207_v12 = vrot.slane %v1206_v60, 1 }
 0x95c   : > { %v1150_v32 = vadd.f32 %v1149_v35, %v1148_v51 }
 0x95d   : > { %v1208_v24 = vmax.f32 %v1206_v60, %v1207_v12 }
 0x95e   : > { %1151 = vadd.xlane.f32.xlu0 %v1150_v32 }
 0x9eb   : > { %v1152_v30 = vpop.xlane.xlu0 %1151 }
 0x9ec   : > { %v1153_v31 = vrot.slane %v1152_v30, 4 }
 0x9ee   : > { %v1154_v59 = vadd.f32 %v1153_v31, %v1152_v30 }
 0x9f0   : > { %v1155_v36 = vrot.slane %v1154_v59, 2 }
 0x9f2   : > { %v1156_v41 = vadd.f32 %v1155_v36, %v1154_v59 }
 0x9f4   : > { %v1157_v20 = vrot.slane %v1156_v41, 1 }
 0x9f6   : > { %v1158_v62 = vadd.f32 %v1157_v20, %v1156_v41 }
 0x9f8   : > { %1718 = vpush %v1158_v62 }
 0x9f9   : > { %1720 = vpush %v1208_v24 }
 0xa29   : > { %s1719_s30 = spop %1718 }
 0xa2a   : > { %v1160_v37 = vstv %s1719_s30  ;;  %s1721_s4 = spop %1720  ;;  %s1901_s30 = sshll.u32 %s1963_s16, 4  ;;  %s1902_s30 = int_to_ptr.vmem [resolvable:$false] %s1901_s30 }
 0xa2b   : > { %v3022_v13 = vadd.f32 %v1160_v37, %v2842_v40  ;;  %v3024_v61 = vstv %s1721_s4  ;;  %s1903_s4 = scalar_lea.vmem %s1902_s30, 256  ;;  %p1904_p0 = scmp.lt.s32.totalorder %s3279_s20, %s1902_s30 }
 0xa2c   : > { %v1211_v57 = vsub.f32 %v2890_v55, %v3024_v61  ;;  %v1212_v26 = vsub.f32 %v3479_v16, %v3024_v61  ;;  %v1213_v9 = vsub.f32 %v3480_v63, %v3024_v61  ;;  %v1214_v49 = vsub.f32 %v3481_v8, %v3024_v61  ;;  %p1905_p1 = scmp.lt.s32.totalorder %s1903_s4, %s1897_s29 }
 0xa2d   : > { %v1215_v2 = vsub.f32 %v3482_v18, %v3024_v61  ;;  %v1216_v14 = vsub.f32 %v3483_v22, %v3024_v61  ;;  %v1217_v29 = vsub.f32 %v3484_v11, %v3024_v61  ;;  %v1218_v28 = vsub.f32 %v3485_v48, %v3024_v61 }
 0xa2e   : > { %v1219_v23 = vmul.f32 1.442695, %v1211_v57  ;;  %v1221_v40 = vmul.f32 1.442695, %v1212_v26  ;;  %v1223_v10 = vmul.f32 1.442695, %v1213_v9  ;;  %p1906_p2 = por %p1905_p1, %p1904_p0 }
 0xa2f   : > { %v1225_v56 = vmul.f32 1.442695, %v1214_v49  ;;  %v1227_v34 = vmul.f32 1.442695, %v1215_v2  ;;  %v1229_v44 = vmul.f32 1.442695, %v1216_v14  ;;  %v1340_v2 = vpop.permute.xlu1 %1339 }
 0xa30   : > { %1857 = vpow2.f32 %v1219_v23  ;;  %v1231_v54 = vmul.f32 1.442695, %v1217_v29  ;;  %v1233_v27 = vmul.f32 1.442695, %v1218_v28  ;;  %v3486_v26 = vld [vmem:[#allocation22_spill] sm:$0xff]  ;;  %v3487_v9 = vld [vmem:[#allocation23_spill] sm:$0xff]  ;;  %p1907_p3 = pnand %p1906_p2, %p1900_p13 }
 0xa31   : > { %1859 = vpow2.f32 %v1221_v40  ;;  %v3488_v49 = vld [vmem:[#allocation24_spill] sm:$0xff] }
 0xa32   : > { %1861 = vpow2.f32 %v1223_v10 }
 0xa33   : > { %1863 = vpow2.f32 %v1225_v56  ;;  %v1344_v23 = vpop.permute.xlu1 %1343 }
 0xa34   : > { %1865 = vpow2.f32 %v1227_v34 }
 0xa35   : > { %1867 = vpow2.f32 %v1229_v44 }
 0xa36   : > { %1869 = vpow2.f32 %v1231_v54 }
 0xa37   : > { %1871 = vpow2.f32 %v1233_v27  ;;  %v1346_v40 = vpop.permute.xlu1 %1345 }
 0xa3a   : > { %v3042_v47 = vpop.eup %1857 }
 0xa3b   : > { %v3044_v17 = vpop.eup %1859  ;;  %v1235_v7 = vsel %vm240_vm0, %v3042_v47, 0.0  ;;  %v1350_v10 = vpop.permute.xlu1 %1349 }
 0xa3c   : > { %v3048_v39 = vpop.eup %1861  ;;  %v1236_v51 = vsel %vm240_vm0, %v3044_v17, 0.0 }
 0xa3d   : > { %v3052_v35 = vpop.eup %1863  ;;  %v1237_v32 = vadd.f32 %v1236_v51, %v1235_v7  ;;  %v1238_v15 = vsel %vm240_vm0, %v3048_v39, 0.0  ;;  %v3082_v7 = vsel %vm2252_vm14, %v1340_v2, -1e+09 }
 0xa3e   : > { %v3056_v45 = vpop.eup %1865  ;;  %v1240_v3 = vsel %vm240_vm0, %v3052_v35, 0.0 }
 0xa3f   : > { %v1239_v43 = vadd.f32 %v1238_v15, %v1237_v32  ;;  %v3060_v30 = vpop.eup %1867  ;;  %v1242_v59 = vsel %vm240_vm0, %v3056_v45, 0.0  ;;  %v1354_v28 = vpop.permute.xlu1 %1353 }
 0xa40   : > { %v3064_v60 = vpop.eup %1869  ;;  %v1244_v41 = vsel %vm240_vm0, %v3060_v30, 0.0  ;;  %v3086_v32 = vsel %vm2317_vm12, %v1354_v28, -1e+09 }
 0xa41   : > { %v1241_v31 = vadd.f32 %v1240_v3, %v1239_v43  ;;  %v3068_v12 = vpop.eup %1871  ;;  %v1246_v62 = vsel %vm240_vm0, %v3064_v60, 0.0  ;;  %v1381_v2 = vsel %vm240_vm0, %v3086_v32, -inf }
 0xa42   : > { %v1248_v37 = vsel %vm240_vm0, %v3068_v12, 0.0 }
 0xa43   : > { %v1243_v36 = vadd.f32 %v1242_v59, %v1241_v31 }
 0xa45   : > { %v1245_v20 = vadd.f32 %v1244_v41, %v1243_v36 }
 0xa47   : > { %v1247_v24 = vadd.f32 %v1246_v62, %v1245_v20  ;;  %v3100_v62 = vsel %vm2267_vm5, %v1344_v23, -1e+09 }
 0xa49   : > { %v1249_v57 = vadd.f32 %v1248_v37, %v1247_v24  ;;  %v3104_v37 = vsel %vm2281_vm8, %v1346_v40, -1e+09 }
 0xa4b   : > { %1250 = vadd.xlane.f32.xlu0 %v1249_v57 }
 0xa61   : > { %1341 = vrot.lane.b32.xlu0 %v3486_v26, %s1962_s6  ;;  %v3108_v26 = vsel %vm2262_vm4, %v1350_v10, -1e+09  ;;  %v1373_v10 = vsel %vm240_vm0, %v3100_v62, -inf }
 0xa62   : > { %v1377_v28 = vsel %vm240_vm0, %v3108_v26, -inf }
 0xa65   : > { %1347 = vrot.lane.b32.xlu0 %v3487_v9, %s1962_s6 }
 0xa69   : > { %1351 = vrot.lane.b32.xlu0 %v3488_v49, %s1962_s6  ;;  %v1371_v49 = vsel %vm240_vm0, %v3082_v7, -inf }
 0xad8   : > { %v1251_v56 = vpop.xlane.xlu0 %1250 }
 0xad9   : > { %v1252_v14 = vrot.slane %v1251_v56, 4 }
 0xadb   : > { %v1253_v29 = vadd.f32 %v1252_v14, %v1251_v56 }
 0xadc   : > { %v1342_v34 = vpop.permute.xlu0 %1341 }
 0xadd   : > { %v1254_v44 = vrot.slane %v1253_v29, 2  ;;  %v3090_v3 = vsel %vm2257_vm1, %v1342_v34, -1e+09  ;;  %v1374_v34 = vsel %vm240_vm0, %v3104_v37, -inf }
 0xade   : > { %v1372_v56 = vsel %vm240_vm0, %v3090_v3, -inf }
 0xadf   : > { %v1255_v54 = vadd.f32 %v1254_v44, %v1253_v29  ;;  %v1378_v27 = vmax.f32 %v1372_v56, %v1377_v28 }
 0xae0   : > { %v1348_v15 = vpop.permute.xlu0 %1347 }
 0xae1   : > { %v3094_v59 = vsel %vm2276_vm7, %v1348_v15, -1e+09  ;;  %v1256_v36 = vrot.slane %v1255_v54, 1 }
 0xae2   : > { %v1375_v41 = vsel %vm240_vm0, %v3094_v59, -inf }
 0xae3   : > { %v1257_v9 = vadd.f32 %v1256_v36, %v1255_v54  ;;  %v1376_v14 = vmax.f32 %v1371_v49, %v1375_v41  ;;  %v1382_v54 = vmax.f32 %v1374_v34, %v1381_v2 }
 0xae4   : > { %v1352_v23 = vpop.permute.xlu0 %1351 }
 0xae5   : > { %v3118_v40 = vsel %vm2294_vm11, %v1352_v23, -1e+09  ;;  %1722 = vpush %v1257_v9  ;;  %v1383_v15 = vmax.f32 %v1376_v14, %v1378_v27 }
 0xae6   : > { %v1379_v44 = vsel %vm240_vm0, %v3118_v40, -inf }
 0xae7   : > { %v1380_v51 = vmax.f32 %v1373_v10, %v1379_v44 }
 0xae9   : > { %v1384_v43 = vmax.f32 %v1380_v51, %v1382_v54 }
 0xaeb   : > { %v1385_v31 = vmax.f32 %v1383_v15, %v1384_v43 }
 0xaed   : > { %1386 = vmax.xlane.f32.xlu1 %v1385_v31 }
 0xb16   : > { %s1723_s5 = spop %1722 }
 0xb17   : > { %v1259_v36 = vstv %s1723_s5 }
 0xb18   : > { %1873 = vrcp.f32 %v1259_v36 }
 0xb19   : > { %1875 = vlog2.f32 %v1259_v36 }
 0xb22   : > { %v1874_v41 = vpop.eup %1873 }
 0xb23   : > { %v1876_v20 = vpop.eup %1875  ;;  %v1262_v24 = vmul.f32 %v1874_v41, %v3042_v47  ;;  %v1263_v57 = vmul.f32 %v1874_v41, %v3044_v17  ;;  %v1264_v9 = vmul.f32 %v1874_v41, %v3048_v39  ;;  %v1265_v49 = vmul.f32 %v1874_v41, %v3052_v35 }
 0xb24   : > { %v1271_v2 = vmul.f32 0.6931472, %v1876_v20  ;;  %v1266_v56 = vmul.f32 %v1874_v41, %v3056_v45  ;;  %v1267_v23 = vmul.f32 %v1874_v41, %v3060_v30  ;;  %v1268_v14 = vmul.f32 %v1874_v41, %v3064_v60 }
 0xb25   : > { %v1269_v29 = vmul.f32 %v1874_v41, %v3068_v12  ;;  %v3137_v10 = vadd.f32 %v1262_v24, %v2957_v21  ;;  %v3140_v47 = vadd.f32 %v1263_v57, %v2960_v38  ;;  %v3143_v17 = vadd.f32 %v1264_v9, %v2963_v0 }
 0xb26   : > { %v1272_v39 = vadd.f32 %v1271_v2, %v3024_v61  ;;  %v3147_v35 = vadd.f32 %v1265_v49, %v2967_v58  ;;  %v3150_v45 = vadd.f32 %v1266_v56, %v2970_v4  ;;  %v3153_v30 = vadd.f32 %v1267_v23, %v2973_v1 }
 0xb27   : > { %v3156_v21 = vadd.f32 %v1268_v14, %v2976_v25  ;;  %v3159_v38 = vadd.f32 %v1269_v29, %v2979_v33 }
 0xb28   : > { %v1273_v0 = vsub.f32 %v2890_v55, %v1272_v39  ;;  %v1274_v60 = vsub.f32 %v3479_v16, %v1272_v39  ;;  %v1275_v61 = vsub.f32 %v3480_v63, %v1272_v39  ;;  %v1276_v58 = vsub.f32 %v3481_v8, %v1272_v39 }
 0xb29   : > { %v1277_v4 = vsub.f32 %v3482_v18, %v1272_v39  ;;  %v1278_v28 = vsub.f32 %v3483_v22, %v1272_v39  ;;  %v1279_v25 = vsub.f32 %v3484_v11, %v1272_v39  ;;  %v1280_v33 = vsub.f32 %v3485_v48, %v1272_v39 }
 0xb2a   : > { %v1281_v12 = vmul.f32 %v1273_v0, %v1262_v24  ;;  %v1282_v34 = vmul.f32 %v1274_v60, %v1263_v57  ;;  %v1283_v1 = vmul.f32 %v1275_v61, %v1264_v9  ;;  %v1284_v44 = vmul.f32 %v1276_v58, %v1265_v49 }
 0xb2b   : > { %v1285_v54 = vmul.f32 %v1277_v4, %v1266_v56  ;;  %v3173_v18 = vadd.f32 %v1273_v0, %v2993_v42  ;;  %v3176_v27 = vadd.f32 %v1274_v60, %v2996_v46  ;;  %v3179_v22 = vadd.f32 %v1275_v61, %v2999_v5 }
 0xb2c   : > { %v1289_v55 = vsel %vm240_vm0, %v1281_v12, 0.0  ;;  %v1290_v16 = vsel %vm240_vm0, %v1282_v34, 0.0  ;;  %v1292_v8 = vsel %vm240_vm0, %v1283_v1, 0.0  ;;  %v3182_v48 = vadd.f32 %v1276_v58, %v3002_v53 }
 0xb2d   : > { %v1291_v63 = vadd.f32 %v1290_v16, %v1289_v55  ;;  %v3185_v51 = vadd.f32 %v1277_v4, %v3005_v19  ;;  %v3188_v15 = vadd.f32 %v1278_v28, %v3008_v6  ;;  %v1286_v43 = vmul.f32 %v1278_v28, %v1267_v23 }
 0xb2e   : > { %v1294_v42 = vsel %vm240_vm0, %v1284_v44, 0.0  ;;  %v3192_v31 = vadd.f32 %v1279_v25, %v3012_v50  ;;  %v3195_v46 = vadd.f32 %v1280_v33, %v3015_v52  ;;  %v1287_v36 = vmul.f32 %v1279_v25, %v1268_v14 }
 0xb2f   : > { %v1293_v11 = vadd.f32 %v1292_v8, %v1291_v63  ;;  %v1296_v53 = vsel %vm240_vm0, %v1285_v54, 0.0  ;;  %v1288_v20 = vmul.f32 %v1280_v33, %v1269_v29  ;;  %v1298_v19 = vsel %vm240_vm0, %v1286_v43, 0.0 }
 0xb30   : > { %v1300_v6 = vsel %vm240_vm0, %v1287_v36, 0.0 }
 0xb31   : > { %v1295_v5 = vadd.f32 %v1294_v42, %v1293_v11  ;;  %v1302_v9 = vsel %vm240_vm0, %v1288_v20, 0.0 }
 0xb33   : > { %v1297_v41 = vadd.f32 %v1296_v53, %v1295_v5 }
 0xb35   : > { %v1299_v24 = vadd.f32 %v1298_v19, %v1297_v41 }
 0xb37   : > { %v1301_v57 = vadd.f32 %v1300_v6, %v1299_v24 }
 0xb39   : > { %v1303_v49 = vadd.f32 %v1302_v9, %v1301_v57 }
 0xb3b   : > { %1304 = vadd.xlane.f32.xlu0 %v1303_v49 }
 0xb7a   : > { %v1387_v50 = vpop.xlane.xlu1 %1386 }
 0xb7b   : > { %v1388_v2 = vrot.slane %v1387_v50, 4 }
 0xb7d   : > { %v1389_v52 = vmax.f32 %v1387_v50, %v1388_v2 }
 0xb7f   : > { %v1390_v56 = vrot.slane %v1389_v52, 2 }
 0xb81   : > { %v1391_v0 = vmax.f32 %v1389_v52, %v1390_v56 }
 0xb83   : > { %v1392_v61 = vrot.slane %v1391_v0, 1 }
 0xb85   : > { %v1393_v12 = vmax.f32 %v1391_v0, %v1392_v61 }
 0xbc8   : > { %v1305_v23 = vpop.xlane.xlu0 %1304 }
 0xbc9   : > { %v1306_v14 = vrot.slane %v1305_v23, 4 }
 0xbcb   : > { %v1307_v39 = vadd.f32 %v1306_v14, %v1305_v23 }
 0xbcd   : > { %v1308_v60 = vrot.slane %v1307_v39, 2 }
 0xbcf   : > { %v1309_v29 = vadd.f32 %v1308_v60, %v1307_v39 }
 0xbd1   : > { %v1310_v58 = vrot.slane %v1309_v29, 1 }
 0xbd3   : > { %v1311_v4 = vadd.f32 %v1310_v58, %v1309_v29 }
 0xbd5   : > { %1724 = vpush %v1311_v4 }
 0xbd6   : > { %1726 = vpush %v1393_v12 }
 0xc06   : > { %s1725_s6 = spop %1724 }
 0xc07   : > { %v1313_v34 = vstv %s1725_s6  ;;  %s1727_s7 = spop %1726 }
 0xc08   : > { %v3202_v1 = vadd.f32 %v1313_v34, %v3022_v13  ;;  %v3204_v28 = vstv %s1727_s7 }
 0xc09   : > { %v1396_v25 = vsub.f32 %v3082_v7, %v3204_v28  ;;  %v1397_v33 = vsub.f32 %v3090_v3, %v3204_v28  ;;  %v1398_v44 = vsub.f32 %v3100_v62, %v3204_v28  ;;  %v1399_v55 = vsub.f32 %v3104_v37, %v3204_v28 }
 0xc0a   : > { %v1400_v16 = vsub.f32 %v3094_v59, %v3204_v28  ;;  %v1401_v11 = vsub.f32 %v3108_v26, %v3204_v28  ;;  %v1402_v43 = vsub.f32 %v3118_v40, %v3204_v28  ;;  %v1403_v5 = vsub.f32 %v3086_v32, %v3204_v28 }
 0xc0b   : > { %v1404_v54 = vmul.f32 1.442695, %v1396_v25  ;;  %v1406_v13 = vmul.f32 1.442695, %v1397_v33  ;;  %v1408_v63 = vmul.f32 1.442695, %v1398_v44 }
 0xc0c   : > { %v1410_v8 = vmul.f32 1.442695, %v1399_v55  ;;  %v1412_v42 = vmul.f32 1.442695, %v1400_v16  ;;  %v1414_v36 = vmul.f32 1.442695, %v1401_v11 }
 0xc0d   : > { %1877 = vpow2.f32 %v1404_v54  ;;  %v1416_v53 = vmul.f32 1.442695, %v1402_v43  ;;  %v1418_v41 = vmul.f32 1.442695, %v1403_v5 }
 0xc0e   : > { %1879 = vpow2.f32 %v1406_v13 }
 0xc0f   : > { %1881 = vpow2.f32 %v1408_v63 }
 0xc10   : > { %1883 = vpow2.f32 %v1410_v8 }
 0xc11   : > { %1885 = vpow2.f32 %v1412_v42 }
 0xc12   : > { %1887 = vpow2.f32 %v1414_v36 }
 0xc13   : > { %1889 = vpow2.f32 %v1416_v53 }
 0xc14   : > { %1891 = vpow2.f32 %v1418_v41 }
 0xc17   : > { %v1878_v20 = vpop.eup %1877 }
 0xc18   : > { %v1880_v19 = vpop.eup %1879  ;;  %v1420_v24 = vsel %vm240_vm0, %v1878_v20, 0.0 }
 0xc19   : > { %v1882_v6 = vpop.eup %1881  ;;  %v1421_v57 = vsel %vm240_vm0, %v1880_v19, 0.0 }
 0xc1a   : > { %v1884_v9 = vpop.eup %1883  ;;  %v1422_v49 = vadd.f32 %v1421_v57, %v1420_v24  ;;  %v1423_v50 = vsel %vm240_vm0, %v1882_v6, 0.0 }
 0xc1b   : > { %v1886_v2 = vpop.eup %1885  ;;  %v1425_v56 = vsel %vm240_vm0, %v1884_v9, 0.0 }
 0xc1c   : > { %v1424_v52 = vadd.f32 %v1423_v50, %v1422_v49  ;;  %v1888_v23 = vpop.eup %1887  ;;  %v1427_v39 = vsel %vm240_vm0, %v1886_v2, 0.0 }
 0xc1d   : > { %v1890_v0 = vpop.eup %1889  ;;  %v1429_v29 = vsel %vm240_vm0, %v1888_v23, 0.0 }
 0xc1e   : > { %v1426_v14 = vadd.f32 %v1425_v56, %v1424_v52  ;;  %v1892_v61 = vpop.eup %1891  ;;  %v1431_v4 = vsel %vm240_vm0, %v1890_v0, 0.0 }
 0xc1f   : > { %v1433_v34 = vsel %vm240_vm0, %v1892_v61, 0.0 }
 0xc20   : > { %v1428_v60 = vadd.f32 %v1427_v39, %v1426_v14 }
 0xc22   : > { %v1430_v58 = vadd.f32 %v1429_v29, %v1428_v60 }
 0xc24   : > { %v1432_v12 = vadd.f32 %v1431_v4, %v1430_v58 }
 0xc26   : > { %v1434_v25 = vadd.f32 %v1433_v34, %v1432_v12 }
 0xc28   : > { %1435 = vadd.xlane.f32.xlu0 %v1434_v25 }
 0xcb5   : > { %v1436_v33 = vpop.xlane.xlu0 %1435 }
 0xcb6   : > { %v1437_v44 = vrot.slane %v1436_v33, 4 }
 0xcb8   : > { %v1438_v55 = vadd.f32 %v1437_v44, %v1436_v33 }
 0xcba   : > { %v1439_v16 = vrot.slane %v1438_v55, 2 }
 0xcbc   : > { %v1440_v54 = vadd.f32 %v1439_v16, %v1438_v55 }
 0xcbe   : > { %v1441_v13 = vrot.slane %v1440_v54, 1 }
 0xcc0   : > { %v1442_v63 = vadd.f32 %v1441_v13, %v1440_v54 }
 0xcc2   : > { %1728 = vpush %v1442_v63 }
 0xcf3   : > { %s1729_s8 = spop %1728 }
 0xcf4   : > { %v1444_v8 = vstv %s1729_s8 }
 0xcf5   : > { %1893 = vrcp.f32 %v1444_v8 }
 0xcf6   : > { %1895 = vlog2.f32 %v1444_v8 }
 0xcff   : > { %v1894_v11 = vpop.eup %1893 }
 0xd00   : > { %v1896_v43 = vpop.eup %1895  ;;  %v1447_v42 = vmul.f32 %v1894_v11, %v1878_v20  ;;  %v1448_v5 = vmul.f32 %v1894_v11, %v1880_v19  ;;  %v1449_v36 = vmul.f32 %v1894_v11, %v1882_v6  ;;  %v1450_v53 = vmul.f32 %v1894_v11, %v1884_v9 }
 0xd01   : > { %v1456_v41 = vmul.f32 0.6931472, %v1896_v43  ;;  %v1451_v24 = vmul.f32 %v1894_v11, %v1886_v2  ;;  %v1452_v49 = vmul.f32 %v1894_v11, %v1888_v23  ;;  %v1453_v50 = vmul.f32 %v1894_v11, %v1890_v0 }
 0xd02   : > { %v1454_v52 = vmul.f32 %v1894_v11, %v1892_v61  ;;  %v1500_v56 = vadd.f32 %v1447_v42, %v3137_v10  ;;  %v1501_v14 = vadd.f32 %v1448_v5, %v3140_v47  ;;  %v1502_v39 = vadd.f32 %v1449_v36, %v3143_v17 }
 0xd03   : > { %v1457_v57 = vadd.f32 %v1456_v41, %v3204_v28  ;;  %v1503_v60 = vadd.f32 %v1450_v53, %v3147_v35  ;;  %v1504_v47 = vadd.f32 %v1451_v24, %v3150_v45 }
 0xd05   : > { %v1458_v20 = vsub.f32 %v3082_v7, %v1457_v57  ;;  %v1459_v19 = vsub.f32 %v3090_v3, %v1457_v57  ;;  %v1460_v6 = vsub.f32 %v3100_v62, %v1457_v57  ;;  %v1461_v9 = vsub.f32 %v3104_v37, %v1457_v57 }
 0xd06   : > { %v1462_v28 = vsub.f32 %v3094_v59, %v1457_v57  ;;  %v1463_v2 = vsub.f32 %v3108_v26, %v1457_v57  ;;  %v1464_v10 = vsub.f32 %v3118_v40, %v1457_v57  ;;  %v1505_v7 = vadd.f32 %v1452_v49, %v3153_v30 }
 0xd07   : > { %v1466_v23 = vmul.f32 %v1458_v20, %v1447_v42  ;;  %v1467_v17 = vmul.f32 %v1459_v19, %v1448_v5  ;;  %v1468_v0 = vmul.f32 %v1460_v6, %v1449_v36  ;;  %v1469_v35 = vmul.f32 %v1461_v9, %v1450_v53 }
 0xd08   : > { %v1470_v29 = vmul.f32 %v1462_v28, %v1451_v24  ;;  %v1506_v3 = vadd.f32 %v1453_v50, %v3156_v21  ;;  %v1507_v62 = vadd.f32 %v1454_v52, %v3159_v38  ;;  %v1465_v37 = vsub.f32 %v3086_v32, %v1457_v57 }
 0xd09   : > { %v1471_v59 = vmul.f32 %v1463_v2, %v1452_v49  ;;  %v1474_v26 = vsel %vm240_vm0, %v1466_v23, 0.0  ;;  %v1475_v40 = vsel %vm240_vm0, %v1467_v17, 0.0  ;;  %v1472_v61 = vmul.f32 %v1464_v10, %v1453_v50 }
 0xd0a   : > { %v1476_v45 = vadd.f32 %v1475_v40, %v1474_v26  ;;  %v1477_v58 = vsel %vm240_vm0, %v1468_v0, 0.0  ;;  %v1479_v4 = vsel %vm240_vm0, %v1469_v35, 0.0  ;;  %v1481_v12 = vsel %vm240_vm0, %v1470_v29, 0.0 }
 0xd0b   : > { %v1508_v30 = vadd.f32 %v1458_v20, %v3173_v18  ;;  %v1509_v21 = vadd.f32 %v1459_v19, %v3176_v27  ;;  %v1510_v38 = vadd.f32 %v1460_v6, %v3179_v22  ;;  %v1511_v34 = vadd.f32 %v1461_v9, %v3182_v48 }
 0xd0c   : > { %v1478_v32 = vadd.f32 %v1477_v58, %v1476_v45  ;;  %v1512_v25 = vadd.f32 %v1462_v28, %v3185_v51  ;;  %v1513_v33 = vadd.f32 %v1463_v2, %v3188_v15  ;;  %v1514_v44 = vadd.f32 %v1464_v10, %v3192_v31 }
 0xd0d   : > { %v1515_v55 = vadd.f32 %v1465_v37, %v3195_v46  ;;  %v1517_v16 = vmul.f32 %v1508_v30, %v1500_v56  ;;  %v1518_v54 = vmul.f32 %v1509_v21, %v1501_v14  ;;  %v1519_v63 = vmul.f32 %v1510_v38, %v1502_v39 }
 0xd0e   : > { %v1480_v13 = vadd.f32 %v1479_v4, %v1478_v32  ;;  %v1520_v18 = vmul.f32 %v1511_v34, %v1503_v60  ;;  %v1521_v8 = vmul.f32 %v1512_v25, %v1504_v47  ;;  %v1522_v27 = vmul.f32 %v1513_v33, %v1505_v7 }
 0xd0f   : > { %v1523_v11 = vmul.f32 %v1514_v44, %v1506_v3  ;;  %v1524_v22 = vmul.f32 %v1515_v55, %v1507_v62  ;;  %v1525_v43 = vsel %vm240_vm0, %v1517_v16, 0.0  ;;  %v1526_v51 = vsel %vm240_vm0, %v1518_v54, 0.0 }
 0xd10   : > { %v1482_v48 = vadd.f32 %v1481_v12, %v1480_v13  ;;  %v1473_v42 = vmul.f32 %v1465_v37, %v1454_v52  ;;  %v1483_v15 = vsel %vm240_vm0, %v1471_v59, 0.0  ;;  %v1527_v31 = vadd.f32 %v1526_v51, %v1525_v43 }
 0xd11   : > { %v1528_v46 = vsel %vm240_vm0, %v1519_v63, 0.0  ;;  %v1485_v36 = vsel %vm240_vm0, %v1472_v61, 0.0  ;;  %v1530_v24 = vsel %vm240_vm0, %v1520_v18, 0.0  ;;  %v1532_v56 = vsel %vm240_vm0, %v1521_v8, 0.0 }
 0xd12   : > { %v1484_v5 = vadd.f32 %v1483_v15, %v1482_v48  ;;  %v1529_v53 = vadd.f32 %v1528_v46, %v1527_v31  ;;  %v1487_v57 = vsel %vm240_vm0, %v1473_v42, 0.0  ;;  %v1534_v52 = vsel %vm240_vm0, %v1522_v27, 0.0 }
 0xd13   : > { %v1536_v60 = vsel %vm240_vm0, %v1523_v11, 0.0  ;;  %v1538_v19 = vsel %vm240_vm0, %v1524_v22, 0.0 }
 0xd14   : > { %v1486_v41 = vadd.f32 %v1485_v36, %v1484_v5  ;;  %v1531_v49 = vadd.f32 %v1530_v24, %v1529_v53 }
 0xd16   : > { %v1488_v50 = vadd.f32 %v1487_v57, %v1486_v41  ;;  %v1533_v14 = vadd.f32 %v1532_v56, %v1531_v49 }
 0xd18   : > { %1489 = vadd.xlane.f32.xlu0 %v1488_v50  ;;  %v1535_v39 = vadd.f32 %v1534_v52, %v1533_v14 }
 0xd1a   : > { %v1537_v20 = vadd.f32 %v1536_v60, %v1535_v39 }
 0xd1c   : > { %v1539_v6 = vadd.f32 %v1538_v19, %v1537_v20 }
 0xd1e   : > { %1540 = vadd.xlane.f32.xlu1 %v1539_v6 }
 0xda5   : > { %v1490_v9 = vpop.xlane.xlu0 %1489 }
 0xda6   : > { %v1491_v28 = vrot.slane %v1490_v9, 4 }
 0xda8   : > { %v1492_v2 = vadd.f32 %v1491_v28, %v1490_v9 }
 0xdaa   : > { %v1493_v10 = vrot.slane %v1492_v2, 2 }
 0xdab   : > { %v1541_v23 = vpop.xlane.xlu1 %1540 }
 0xdac   : > { %v1494_v47 = vadd.f32 %v1493_v10, %v1492_v2  ;;  %v1542_v17 = vrot.slane %v1541_v23, 4 }
 0xdae   : > { %v1495_v0 = vrot.slane %v1494_v47, 1  ;;  %v1543_v35 = vadd.f32 %v1542_v17, %v1541_v23 }
 0xdb0   : > { %v1496_v29 = vadd.f32 %v1495_v0, %v1494_v47  ;;  %v1544_v7 = vrot.slane %v1543_v35, 2 }
 0xdb2   : > { %1730 = vpush %v1496_v29  ;;  %v1545_v3 = vadd.f32 %v1544_v7, %v1543_v35 }
 0xdb4   : > { %v1546_v62 = vrot.slane %v1545_v3, 1 }
 0xdb6   : > { %v1547_v37 = vadd.f32 %v1546_v62, %v1545_v3 }
 0xdb8   : > { %1732 = vpush %v1547_v37 }
 0xde3   : > { %s1731_s10 = spop %1730 }
 0xde4   : > { %v1498_v59 = vstv %s1731_s10 }
 0xde5   : > { %v1499_v26 = vadd.f32 %v1498_v59, %v3202_v1 }
 0xde7   : > { %v1516_v40 = vmul.f32 6.0, %v1499_v26 }
 0xde9   : > { %s1733_s24 = spop %1732 }
 0xdea   : > { %v1549_v61 = vstv %s1733_s24 }
 0xdeb   : > { %v1550_v45 = vsub.f32 %v1516_v40, %v1549_v61 }
 0xded   : > { %1551 = vst [vmem:[%s189_s19] sm:$0xff] %v1550_v45 }
 0xdee   : > { %1910 = shalt.err (!%p1907_p3)
}
 0xdef   : > { %s1911_s5 = scalar_lea.hbm %s3277_s27, 128  ;;  %s1915_s8 = scalar_lea.hbm %s3322_s3, 256 }
 0xdf0   : > { %p1912_p4 = scmp.ne.s32.totalorder %s3277_s27, %s1911_s5  ;;  %p1916_p9 = scmp.lt.u32.totalorder %s3277_s27, %s3322_s3 }
 0xdf1   : > { %p1917_p10 = scmp.lt.u32.totalorder %s1915_s8, %s1911_s5  ;;  %p1919_p12 = scmp.lt.u32.totalorder %s1911_s5, %s3277_s27 }
 0xdf2   : > { %p1913_p7 = pnand %p1912_p4, %p2022_p5 }
 0xdf3   : > { %p1918_p11 = por %p1917_p10, %p1916_p9 }
 0xdf4   : > { %p1914_p8 = pneg %p1913_p7 }
 0xdf5   : > { %p1920_p13 = por %p1919_p12, %p1918_p11 }
 0xdf7   : > { %p1921_p0 = pnand %p1920_p13, %p1914_p8 }
 0xdf9   : > { %1924 = shalt.err (!%p1921_p0)
}
 0xdfa   : > { %1734 = dma.vmem_to_hbm [thread:$0]  (%p2022_p5), %s3279_s20, 128, %s3277_s27, %s1553_s28  }
 0xdfb PF: > { %p1740_p1 = scmp.ge.s32.totalorder %s1959_s15, 2  ;;  %s1578_s11 = sand.u32 1, %s1947_s12  }
 0xdfc   : > { %s1579_s17 = scalar_lea.sflag [#allocation3], %s1578_s11 }
 0xdfd   : > { %p1737_p2 = pnand %p1740_p1, %p2026_p6 }
 0xdff   : > { %1942 = dma.done.wait (!%p1737_p2), %s1579_s17, 128  }
 0xe00   : > { %1944 = vsyncadd (!%p1737_p2), %s1579_s17, 4294967168  ;;  %p13_p3 = scmp.ge.s32.totalorder %s2009_s18, 4   ;;  %s3497_s12 = smov %s1951_s13 }
 0xe01   : > { %s3498_s13 = smov %s1955_s14  ;;  %s3499_s14 = smov %s2020_s21 }
 0xe02   : > { %s3500_s15 = smov %s2009_s18  ;;  %15 = sbr.rel (!%p13_p3) target bundleno = 3 (0x3), region = 73 }
 0xe09   :  { %1584 = vsyncpa [#allocation3], 1 }
 0xe0a   :  { %1586 = vsyncpa [#allocation3 + $0x1], 1 }

</bundles_post_ra>
